<compile_context>
chip_gen: v5e
topology: v5e:2x2
jax: 0.10.0
libtpu: 0.0.40
codegen_flags: <defaults>
</compile_context>

<pallas_src>
import math

import jax
import jax.numpy as jnp
from jax.experimental import pallas as pl
from jax.experimental.pallas import tpu as pltpu

STATE_DIM = 3    # Pendulum-v1 observation space
ACTION_DIM = 1   # Pendulum-v1 action space
IN_DIM = STATE_DIM + ACTION_DIM
IN_PAD = 8       # padded concat(s, a) width (sublane-friendly K for layer 1)
H1 = 400         # logical hidden sizes (PyTorch module)
H2 = 300
H1P = 512        # lane-padded hidden sizes (multiples of 128)
H2P = 384


def _round_up(x, m):
    return ((x + m - 1) // m) * m


# --------------------------------------------------------------------------- #
# Kernel
# --------------------------------------------------------------------------- #
def qnetwork_kernel(sa_ref, w1_ref, b1_ref,
                    w21_ref, b21_ref, w22_ref, b22_ref,
                    w31_ref, w32_ref, b3_ref,
                    out_ref):
    """Twin-Q MLP forward for one batch tile.

    Layer 1 of both branches is fused into one bf16 matmul on the padded
    concat(s, a); layer 2 runs as two bf16 matmuls; layer 3 is a VPU
    broadcast-multiply + XLU lane reduction (no N=1 MXU matmul).
    """
    sa = sa_ref[...]                                 # (TB, IN_PAD)  bf16

    # Fused layer 1 (both branches): one bf16 MXU pass, f32 accumulate.
    h = (jnp.dot(sa, w1_ref[...], preferred_element_type=jnp.float32)
         + b1_ref[...])                              # (TB, 2*H1P) f32
    h = jnp.maximum(h, 0.0)
    hb = h.astype(jnp.bfloat16)                      # single down-cast for layer 2
    h1 = hb[:, :H1P]                                 # static, 128-aligned slices
    h2 = hb[:, H1P:]

    # Layer 2, per branch: native bf16 matmuls, f32 accumulate + bias + ReLU.
    z1 = jnp.maximum(
        jnp.dot(h1, w21_ref[...], preferred_element_type=jnp.float32)
        + b21_ref[...], 0.0)                         # (TB, H2P) f32
    z2 = jnp.maximum(
        jnp.dot(h2, w22_ref[...], preferred_element_type=jnp.float32)
        + b22_ref[...], 0.0)

    # Layer 3 as VPU multiply + lane reduction (avoids N=1 MXU matmuls).
    q1 = jnp.sum(z1 * w31_ref[...], axis=-1, keepdims=True)   # (TB, 1)
    q2 = jnp.sum(z2 * w32_ref[...], axis=-1, keepdims=True)

    out = jnp.concatenate([q1, q2], axis=1) + b3_ref[...]      # (TB, 2)
    out_ref[...] = out.astype(out_ref.dtype)


# --------------------------------------------------------------------------- #
# Parameter init (PyTorch nn.Linear semantics) and packing for the kernel
# --------------------------------------------------------------------------- #
def init_linear_params(key, fan_in, fan_out):
    """PyTorch nn.Linear default init: U(-1/sqrt(fan_in), 1/sqrt(fan_in)).
    Stored as (in, out) -- transpose of PyTorch's (out, in)."""
    kw, kb = jax.random.split(key)
    bound = 1.0 / math.sqrt(fan_in)
    w = jax.random.uniform(kw, (fan_in, fan_out), jnp.float32, -bound, bound)
    b = jax.random.uniform(kb, (1, fan_out), jnp.float32, -bound, bound)
    return w, b


def init_qnetwork_params(key, state_dim=STATE_DIM, action_dim=ACTION_DIM):
    """Logical (unpadded, f32) parameters matching the PyTorch module."""
    keys = jax.random.split(key, 6)
    in_dim = state_dim + action_dim
    w11, b11 = init_linear_params(keys[0], in_dim, H1)
    w21, b21 = init_linear_params(keys[1], H1, H2)
    w31, b31 = init_linear_params(keys[2], H2, 1)
    w12, b12 = init_linear_params(keys[3], in_dim, H1)
    w22, b22 = init_linear_params(keys[4], H1, H2)
    w32, b32 = init_linear_params(keys[5], H2, 1)
    return (w11, b11, w21, b21, w31, b31, w12, b12, w22, b22, w32, b32)


def pack_qnetwork_params(params):
    """Zero-pad to lane multiples, fuse layer-1 across branches, cast matmul
    weights to bf16 (biases and readout rows stay f32)."""
    (w11, b11, w21, b21, w31, b31, w12, b12, w22, b22, w32, b32) = params

    def pad_to(x, shape):
        return jnp.pad(x, [(0, t - s) for s, t in zip(x.shape, shape)])

    in_dim = w11.shape[0]
    # Fused layer 1: (IN_PAD, 2*H1P); zero-padded rows/cols contribute exactly 0.
    w1 = jnp.concatenate([pad_to(w11, (in_dim, H1P)),
                          pad_to(w12, (in_dim, H1P))], axis=1)
    w1 = pad_to(w1, (IN_PAD, 2 * H1P))
    b1 = jnp.concatenate([pad_to(b11, (1, H1P)),
                          pad_to(b12, (1, H1P))], axis=1)

    w21p = pad_to(w21, (H1P, H2P))
    b21p = pad_to(b21, (1, H2P))
    w22p = pad_to(w22, (H1P, H2P))
    b22p = pad_to(b22, (1, H2P))

    # Final layer as broadcast rows for the VPU/XLU reduction (kept in f32).
    w31r = pad_to(w31.T, (1, H2P))   # (1, H2P)
    w32r = pad_to(w32.T, (1, H2P))
    b3 = jnp.concatenate([b31, b32], axis=1)   # (1, 2)

    bf = lambda x: x.astype(jnp.bfloat16)
    f32 = lambda x: x.astype(jnp.float32)
    return (bf(w1), f32(b1),
            bf(w21p), f32(b21p), bf(w22p), f32(b22p),
            f32(w31r), f32(w32r), f32(b3))


# --------------------------------------------------------------------------- #
# Wrapper
# --------------------------------------------------------------------------- #
def _choose_batch_tiling(B):
    """Pick (TB, Bpad): lane/sublane-friendly tile, >=2 grid steps for larger
    batches (v7x megacore), <=512 rows per tile (amortize per-step overhead)."""
    Bp = _round_up(B, 8)
    if Bp <= 128:
        return Bp, Bp
    if Bp <= 1024:
        Bpad = _round_up(Bp, 256)
        return Bpad // 2, Bpad          # 2 grid steps, tile multiple of 128
    TB = 512
    return TB, _round_up(Bp, TB)


@jax.jit
def qnetwork_forward(s, a, packed_params):
    """Equivalent of QNetwork.forward(s, a) -> (q1, q2), each (B, 1) f32."""
    (w1, b1, w21, b21, w22, b22, w31, w32, b3) = packed_params

    B = s.shape[0]
    TB, Bpad = _choose_batch_tiling(B)
    grid_b = Bpad // TB

    # Fold the torch.cat((s, a), dim=1) into a single padded bf16 input slab.
    sa = jnp.concatenate([s.astype(jnp.float32), a.astype(jnp.float32)], axis=1)
    sa_p = jnp.pad(sa, ((0, Bpad - B), (0, IN_PAD - IN_DIM))).astype(jnp.bfloat16)

    def batch_map(i):
        return (i, 0)

    def resident(i):
        return (0, 0)

    in_specs = [
        pl.BlockSpec((TB, IN_PAD), batch_map),
        pl.BlockSpec((IN_PAD, 2 * H1P), resident),
        pl.BlockSpec((1, 2 * H1P), resident),
        pl.BlockSpec((H1P, H2P), resident),
        pl.BlockSpec((1, H2P), resident),
        pl.BlockSpec((H1P, H2P), resident),
        pl.BlockSpec((1, H2P), resident),
        pl.BlockSpec((1, H2P), resident),
        pl.BlockSpec((1, H2P), resident),
        pl.BlockSpec((1, 2), resident),
    ]
    out_specs = pl.BlockSpec((TB, 2), batch_map)

    flops = 2 * Bpad * (IN_PAD * 2 * H1P + 2 * H1P * H2P + 2 * H2P)
    weight_bytes = (IN_PAD * 2 * H1P + 2 * H1P * H2P) * 2 + 2 * H2P * 4
    bias_bytes = (2 * H1P + 2 * H2P + 2) * 4
    io_bytes = Bpad * IN_PAD * 2 + Bpad * 2 * 4
    cost = pl.CostEstimate(flops=flops, transcendentals=0,
                           bytes_accessed=weight_bytes + bias_bytes + io_bytes)

    out = pl.pallas_call(
        qnetwork_kernel,
        out_shape=jax.ShapeDtypeStruct((Bpad, 2), jnp.float32),
        grid_spec=pltpu.PrefetchScalarGridSpec(
            num_scalar_prefetch=0,
            grid=(grid_b,),
            in_specs=in_specs,
            out_specs=out_specs,
        ),
        compiler_params=pltpu.CompilerParams(
            dimension_semantics=("parallel",),
        ),
        cost_estimate=cost,
    )(sa_p, w1, b1, w21, b21, w22, b22, w31, w32, b3)

    q1 = out[:B, 0:1]
    q2 = out[:B, 1:2]
    return q1, q2


# --------------------------------------------------------------------------- #
# References for correctness checking
# --------------------------------------------------------------------------- #
def reference_forward_f32(s, a, params):
    """Pure-JAX f32 reference matching the PyTorch module exactly."""
    (w11, b11, w21, b21, w31, b31, w12, b12, w22, b22, w32, b32) = params
    x0 = jnp.concatenate([s, a], axis=1)
    x1 = jax.nn.relu(x0 @ w11 + b11)
    x1 = jax.nn.relu(x1 @ w21 + b21)
    q1 = x1 @ w31 + b31
    x2 = jax.nn.relu(x0 @ w12 + b12)
    x2 = jax.nn.relu(x2 @ w22 + b22)
    q2 = x2 @ w32 + b32
    return q1, q2


def reference_forward_packed(s, a, packed_params):
    """Pure-JAX reference using the same bf16 x bf16 contraction as the kernel."""
    (w1, b1, w21, b21, w22, b22, w31, w32, b3) = packed_params
    sa = jnp.concatenate([s.astype(jnp.float32), a.astype(jnp.float32)], axis=1)
    sa = jnp.pad(sa, ((0, 0), (0, IN_PAD - IN_DIM))).astype(jnp.bfloat16)
    h = jax.nn.relu(jnp.dot(sa, w1, preferred_element_type=jnp.float32) + b1)
    hb = h.astype(jnp.bfloat16)
    z1 = jax.nn.relu(jnp.dot(hb[:, :H1P], w21,
                             preferred_element_type=jnp.float32) + b21)
    z2 = jax.nn.relu(jnp.dot(hb[:, H1P:], w22,
                             preferred_element_type=jnp.float32) + b22)
    q1 = jnp.sum(z1 * w31, axis=-1, keepdims=True) + b3[:, 0:1]
    q2 = jnp.sum(z2 * w32, axis=-1, keepdims=True) + b3[:, 1:2]
    return q1, q2


if __name__ == "__main__":
    key = jax.random.PRNGKey(0)
    k_params, k_s, k_a = jax.random.split(key, 3)

    params = init_qnetwork_params(k_params)
    packed = pack_qnetwork_params(params)

    batch = 8
    s = jax.random.normal(k_s, (batch, STATE_DIM), jnp.float32)
    a = jax.random.normal(k_a, (batch, ACTION_DIM), jnp.float32)

    q1, q2 = qnetwork_forward(s, a, packed)
    jax.block_until_ready((q1, q2))

    assert q1.shape == (batch, 1) and q2.shape == (batch, 1)

    # Tight check against a reference using the exact same bf16 contraction.
    rp1, rp2 = reference_forward_packed(s, a, packed)
    assert jnp.allclose(q1, rp1, atol=1e-2, rtol=1e-2)
    assert jnp.allclose(q2, rp2, atol=1e-2, rtol=1e-2)

    # Looser check against the full-f32 PyTorch-equivalent math.
    rf1, rf2 = reference_forward_f32(s, a, params)
    assert jnp.allclose(q1, rf1, atol=8e-2, rtol=8e-2)
    assert jnp.allclose(q2, rf2, atol=8e-2, rtol=8e-2)

    print("KERNEL_OK")
</pallas_src>

<mosaic_0001>
module attributes {stable_mosaic.version = 11 : i64} {
  func.func @qnetwork_kernel(%arg0: i32, %arg1: memref<8x8xbf16, #tpu.memory_space<vmem>>, %arg2: memref<8x1024xbf16, #tpu.memory_space<vmem>>, %arg3: memref<1x1024xf32, #tpu.memory_space<vmem>>, %arg4: memref<512x384xbf16, #tpu.memory_space<vmem>>, %arg5: memref<1x384xf32, #tpu.memory_space<vmem>>, %arg6: memref<512x384xbf16, #tpu.memory_space<vmem>>, %arg7: memref<1x384xf32, #tpu.memory_space<vmem>>, %arg8: memref<1x384xf32, #tpu.memory_space<vmem>>, %arg9: memref<1x384xf32, #tpu.memory_space<vmem>>, %arg10: memref<1x2xf32, #tpu.memory_space<vmem>>, %arg11: memref<8x2xf32, #tpu.memory_space<vmem>>) attributes {dimension_semantics = [#tpu.dimension_semantics<parallel>], iteration_bounds = array<i64: 1>, scalar_prefetch = 0 : i64, scratch_operands = 0 : i64, tpu.core_type = #tpu.core_type<tc>, window_params = [{transform_indices = @transform_0, window_bounds = array<i64: 8, 8>}, {pipeline_mode = #tpu.pipeline_mode<synchronous>, transform_indices = @transform_1, window_bounds = array<i64: 8, 1024>}, {pipeline_mode = #tpu.pipeline_mode<synchronous>, transform_indices = @transform_2, window_bounds = array<i64: 1, 1024>}, {pipeline_mode = #tpu.pipeline_mode<synchronous>, transform_indices = @transform_3, window_bounds = array<i64: 512, 384>}, {pipeline_mode = #tpu.pipeline_mode<synchronous>, transform_indices = @transform_4, window_bounds = array<i64: 1, 384>}, {pipeline_mode = #tpu.pipeline_mode<synchronous>, transform_indices = @transform_5, window_bounds = array<i64: 512, 384>}, {pipeline_mode = #tpu.pipeline_mode<synchronous>, transform_indices = @transform_6, window_bounds = array<i64: 1, 384>}, {pipeline_mode = #tpu.pipeline_mode<synchronous>, transform_indices = @transform_7, window_bounds = array<i64: 1, 384>}, {pipeline_mode = #tpu.pipeline_mode<synchronous>, transform_indices = @transform_8, window_bounds = array<i64: 1, 384>}, {pipeline_mode = #tpu.pipeline_mode<synchronous>, transform_indices = @transform_9, window_bounds = array<i64: 1, 2>}, {transform_indices = @transform_10, window_bounds = array<i64: 8, 2>}]} {
    %c0 = arith.constant 0 : index
    %c0_0 = arith.constant 0 : index
    %0 = vector.load %arg1[%c0, %c0_0] : memref<8x8xbf16, #tpu.memory_space<vmem>>, vector<8x8xbf16>
    %c0_1 = arith.constant 0 : index
    %c0_2 = arith.constant 0 : index
    %1 = vector.load %arg2[%c0_1, %c0_2] : memref<8x1024xbf16, #tpu.memory_space<vmem>>, vector<8x1024xbf16>
    %cst = arith.constant dense<0.000000e+00> : vector<8x1024xf32>
    %2 = tpu.matmul %0, %1, %cst {dimension_numbers = #tpu.dot_dimension_numbers<[1], [0], [0], [1], [0, 0, 1, 1], [], []>} : vector<8x8xbf16>, vector<8x1024xbf16>, vector<8x1024xf32> -> vector<8x1024xf32>
    %c0_3 = arith.constant 0 : index
    %c0_4 = arith.constant 0 : index
    %3 = vector.load %arg3[%c0_3, %c0_4] : memref<1x1024xf32, #tpu.memory_space<vmem>>, vector<1x1024xf32>
    %4 = vector.broadcast %3 : vector<1x1024xf32> to vector<8x1024xf32>
    %5 = arith.addf %2, %4 : vector<8x1024xf32>
    %cst_5 = arith.constant 0.000000e+00 : f32
    %6 = vector.broadcast %cst_5 : f32 to vector<8x1024xf32>
    %7 = arith.maximumf %5, %6 : vector<8x1024xf32>
    %8 = arith.truncf %7 : vector<8x1024xf32> to vector<8x1024xbf16>
    %9 = vector.extract_strided_slice %8 {offsets = [0, 0], sizes = [8, 512], strides = [1, 1]} : vector<8x1024xbf16> to vector<8x512xbf16>
    %10 = vector.extract_strided_slice %8 {offsets = [0, 512], sizes = [8, 512], strides = [1, 1]} : vector<8x1024xbf16> to vector<8x512xbf16>
    %c0_6 = arith.constant 0 : index
    %c0_7 = arith.constant 0 : index
    %11 = vector.load %arg4[%c0_6, %c0_7] : memref<512x384xbf16, #tpu.memory_space<vmem>>, vector<512x384xbf16>
    %cst_8 = arith.constant dense<0.000000e+00> : vector<8x384xf32>
    %12 = tpu.matmul %9, %11, %cst_8 {dimension_numbers = #tpu.dot_dimension_numbers<[1], [0], [0], [1], [0, 0, 1, 1], [], []>} : vector<8x512xbf16>, vector<512x384xbf16>, vector<8x384xf32> -> vector<8x384xf32>
    %c0_9 = arith.constant 0 : index
    %c0_10 = arith.constant 0 : index
    %13 = vector.load %arg5[%c0_9, %c0_10] : memref<1x384xf32, #tpu.memory_space<vmem>>, vector<1x384xf32>
    %14 = vector.broadcast %13 : vector<1x384xf32> to vector<8x384xf32>
    %15 = arith.addf %12, %14 : vector<8x384xf32>
    %cst_11 = arith.constant 0.000000e+00 : f32
    %16 = vector.broadcast %cst_11 : f32 to vector<8x384xf32>
    %17 = arith.maximumf %15, %16 : vector<8x384xf32>
    %c0_12 = arith.constant 0 : index
    %c0_13 = arith.constant 0 : index
    %18 = vector.load %arg6[%c0_12, %c0_13] : memref<512x384xbf16, #tpu.memory_space<vmem>>, vector<512x384xbf16>
    %cst_14 = arith.constant dense<0.000000e+00> : vector<8x384xf32>
    %19 = tpu.matmul %10, %18, %cst_14 {dimension_numbers = #tpu.dot_dimension_numbers<[1], [0], [0], [1], [0, 0, 1, 1], [], []>} : vector<8x512xbf16>, vector<512x384xbf16>, vector<8x384xf32> -> vector<8x384xf32>
    %c0_15 = arith.constant 0 : index
    %c0_16 = arith.constant 0 : index
    %20 = vector.load %arg7[%c0_15, %c0_16] : memref<1x384xf32, #tpu.memory_space<vmem>>, vector<1x384xf32>
    %21 = vector.broadcast %20 : vector<1x384xf32> to vector<8x384xf32>
    %22 = arith.addf %19, %21 : vector<8x384xf32>
    %cst_17 = arith.constant 0.000000e+00 : f32
    %23 = vector.broadcast %cst_17 : f32 to vector<8x384xf32>
    %24 = arith.maximumf %22, %23 : vector<8x384xf32>
    %c0_18 = arith.constant 0 : index
    %c0_19 = arith.constant 0 : index
    %25 = vector.load %arg8[%c0_18, %c0_19] : memref<1x384xf32, #tpu.memory_space<vmem>>, vector<1x384xf32>
    %26 = vector.broadcast %25 : vector<1x384xf32> to vector<8x384xf32>
    %27 = arith.mulf %17, %26 : vector<8x384xf32>
    %cst_20 = arith.constant dense<0.000000e+00> : vector<8xf32>
    %28 = vector.multi_reduction <add>, %27, %cst_20 [1] : vector<8x384xf32> to vector<8xf32>
    %29 = vector.shape_cast %28 : vector<8xf32> to vector<8x1xf32>
    %c0_21 = arith.constant 0 : index
    %c0_22 = arith.constant 0 : index
    %30 = vector.load %arg9[%c0_21, %c0_22] : memref<1x384xf32, #tpu.memory_space<vmem>>, vector<1x384xf32>
    %31 = vector.broadcast %30 : vector<1x384xf32> to vector<8x384xf32>
    %32 = arith.mulf %24, %31 : vector<8x384xf32>
    %cst_23 = arith.constant dense<0.000000e+00> : vector<8xf32>
    %33 = vector.multi_reduction <add>, %32, %cst_23 [1] : vector<8x384xf32> to vector<8xf32>
    %34 = vector.shape_cast %33 : vector<8xf32> to vector<8x1xf32>
    %35 = tpu.concatenate %29, %34 in 1 : vector<8x1xf32>, vector<8x1xf32> -> vector<8x2xf32>
    %c0_24 = arith.constant 0 : index
    %c0_25 = arith.constant 0 : index
    %36 = vector.load %arg10[%c0_24, %c0_25] : memref<1x2xf32, #tpu.memory_space<vmem>>, vector<1x2xf32>
    %37 = vector.broadcast %36 : vector<1x2xf32> to vector<8x2xf32>
    %38 = arith.addf %35, %37 : vector<8x2xf32>
    %c0_26 = arith.constant 0 : index
    %c0_27 = arith.constant 0 : index
    %39 = vector.load %arg11[%c0_26, %c0_27] : memref<8x2xf32, #tpu.memory_space<vmem>>, vector<8x2xf32>
    tpu.vector_store %arg11[%c0_26, %c0_27], %38 {strides = array<i32>} : memref<8x2xf32, #tpu.memory_space<vmem>>, vector<8x2xf32>,
    return
  }
  func.func @transform_0(%arg0: i32) -> (i32, i32) {
    %c0_i32 = arith.constant 0 : i32
    %c0_i32_0 = arith.constant 0 : i32
    return %arg0, %c0_i32 : i32, i32
  }
  func.func @transform_1(%arg0: i32) -> (i32, i32) {
    %c0_i32 = arith.constant 0 : i32
    %c0_i32_0 = arith.constant 0 : i32
    %c0_i32_1 = arith.constant 0 : i32
    return %c0_i32, %c0_i32_0 : i32, i32
  }
  func.func @transform_2(%arg0: i32) -> (i32, i32) {
    %c0_i32 = arith.constant 0 : i32
    %c0_i32_0 = arith.constant 0 : i32
    %c0_i32_1 = arith.constant 0 : i32
    return %c0_i32, %c0_i32_0 : i32, i32
  }
  func.func @transform_3(%arg0: i32) -> (i32, i32) {
    %c0_i32 = arith.constant 0 : i32
    %c0_i32_0 = arith.constant 0 : i32
    %c0_i32_1 = arith.constant 0 : i32
    return %c0_i32, %c0_i32_0 : i32, i32
  }
  func.func @transform_4(%arg0: i32) -> (i32, i32) {
    %c0_i32 = arith.constant 0 : i32
    %c0_i32_0 = arith.constant 0 : i32
    %c0_i32_1 = arith.constant 0 : i32
    return %c0_i32, %c0_i32_0 : i32, i32
  }
  func.func @transform_5(%arg0: i32) -> (i32, i32) {
    %c0_i32 = arith.constant 0 : i32
    %c0_i32_0 = arith.constant 0 : i32
    %c0_i32_1 = arith.constant 0 : i32
    return %c0_i32, %c0_i32_0 : i32, i32
  }
  func.func @transform_6(%arg0: i32) -> (i32, i32) {
    %c0_i32 = arith.constant 0 : i32
    %c0_i32_0 = arith.constant 0 : i32
    %c0_i32_1 = arith.constant 0 : i32
    return %c0_i32, %c0_i32_0 : i32, i32
  }
  func.func @transform_7(%arg0: i32) -> (i32, i32) {
    %c0_i32 = arith.constant 0 : i32
    %c0_i32_0 = arith.constant 0 : i32
    %c0_i32_1 = arith.constant 0 : i32
    return %c0_i32, %c0_i32_0 : i32, i32
  }
  func.func @transform_8(%arg0: i32) -> (i32, i32) {
    %c0_i32 = arith.constant 0 : i32
    %c0_i32_0 = arith.constant 0 : i32
    %c0_i32_1 = arith.constant 0 : i32
    return %c0_i32, %c0_i32_0 : i32, i32
  }
  func.func @transform_9(%arg0: i32) -> (i32, i32) {
    %c0_i32 = arith.constant 0 : i32
    %c0_i32_0 = arith.constant 0 : i32
    %c0_i32_1 = arith.constant 0 : i32
    return %c0_i32, %c0_i32_0 : i32, i32
  }
  func.func @transform_10(%arg0: i32) -> (i32, i32) {
    %c0_i32 = arith.constant 0 : i32
    %c0_i32_0 = arith.constant 0 : i32
    return %arg0, %c0_i32 : i32, i32
  }
}

</mosaic_0001>

<bundles_post_ra>
// kernel: qnetwork_forward.1
= control target key start
LH: loop header
LB: loop body
LE: loop exit
PB: predicated region body
PF: predicated region fallthrough
CT: control target
= control target key end

     0   :  { %15 = vsyncpa [#allocation3], 0  ;;  %s3278_s0 = inlined_call_operand.vmem [shape: bf16[8,8], index: 0, kind: input, shape index: {}]   ;;  %s3279_s1 = inlined_call_operand.vmem [shape: bf16[8,1024], index: 1, kind: input, shape index: {}]   ;;  %s3280_s2 = inlined_call_operand.hbm [shape: f32[1,1024], index: 2, kind: input, shape index: {}]   ;;  %s3281_s3 = inlined_call_operand.hbm [shape: bf16[512,384], index: 3, kind: input, shape index: {}]   ;;  %s3282_s4 = inlined_call_operand.vmem [shape: f32[1,384], index: 4, kind: input, shape index: {}]   ;;  %s3283_s5 = inlined_call_operand.hbm [shape: bf16[512,384], index: 5, kind: input, shape index: {}]   ;;  %s3284_s6 = inlined_call_operand.hbm [shape: f32[1,384], index: 6, kind: input, shape index: {}]   ;;  %s3285_s7 = inlined_call_operand.vmem [shape: f32[1,384], index: 7, kind: input, shape index: {}]   ;;  %s3286_s8 = inlined_call_operand.hbm [shape: f32[1,384], index: 8, kind: input, shape index: {}]   ;;  %s3287_s9 = inlined_call_operand.vmem [shape: f32[1,2], index: 9, kind: input, shape index: {}]   ;;  %s3288_s10 = inlined_call_operand.vmem [shape: f32[8,2], index: 10, kind: output, shape index: {}]  }
   0x1   :  { %16 = vsyncpa [#allocation5], 0  ;;  %s37_s15 = sshll.u32 %s3281_s3, 4  ;;  %s38_s15 = int_to_ptr.hbm [resolvable:$true] %s37_s15 }
   0x2   :  { %17 = vsyncpa [#allocation8], 0  ;;  %s3086_s16 = smov [#allocation4]   ;;  %s66_s20 = sshll.u32 %s3284_s6, 4  ;;  %s67_s20 = int_to_ptr.hbm [resolvable:$true] %s66_s20 }
   0x3   :  { %s39_s17 = sshll.u32 %s3086_s16, 4  ;;  %s3087_s21 = smov 192   ;;  %s40_s17 = int_to_ptr.vmem [resolvable:$true] %s39_s17 }
   0x4   :  { %s3088_s22 = smov 12   ;;  %s3089_s23 = smov [#allocation7]  }
   0x5   :  { %45 = dma.hbm_to_vmem [thread:$0]  %s38_s15, 12288, %s40_s17, [#allocation5], %s3087_s21, %s3087_s21, %s3088_s22  }
   0x6   :  { %s68_s24 = sshll.u32 %s3089_s23, 4  ;;  %s27_s27 = sshll.u32 %s3280_s2, 4  ;;  %s69_s24 = int_to_ptr.vmem [resolvable:$true] %s68_s24  ;;  %s28_s27 = int_to_ptr.hbm [resolvable:$true] %s27_s27 }
   0x7   :  { %71 = dma.hbm_to_vmem [thread:$0]  %s67_s20, 48, %s69_s24, [#allocation8]  }
   0x8   :  { %s52_s29 = sshll.u32 %s3283_s5, 4  ;;  %s3090_s30 = smov [#allocation2]   ;;  %s53_s29 = int_to_ptr.hbm [resolvable:$true] %s52_s29 }
   0x9   :  { %s29_s11 = sshll.u32 %s3090_s30, 4  ;;  %s3091_s6 = smov [#allocation6]   ;;  %s30_s11 = int_to_ptr.vmem [resolvable:$true] %s29_s11 }
   0xa   :  { %32 = dma.hbm_to_vmem [thread:$0]  %s28_s27, 128, %s30_s11, [#allocation3]  }
   0xb   :  { %s54_s12 = sshll.u32 %s3091_s6, 4  ;;  %s79_s15 = sshll.u32 %s3286_s8, 4  ;;  %s55_s12 = int_to_ptr.vmem [resolvable:$true] %s54_s12  ;;  %s80_s15 = int_to_ptr.hbm [resolvable:$true] %s79_s15 }
   0xc   :  { %60 = dma.hbm_to_vmem [thread:$0]  %s53_s29, 12288, %s55_s12, [#allocation5], %s3087_s21, %s3087_s21, %s3088_s22  }
   0xd   :  { %s3092_s2 = smov [#allocation9]  }
   0xe   :  { %s81_s16 = sshll.u32 %s3092_s2, 4  ;;  %s82_s16 = int_to_ptr.vmem [resolvable:$true] %s81_s16 }
   0xf   :  { %84 = dma.hbm_to_vmem [thread:$0]  %s80_s15, 48, %s82_s16, [#allocation8]  }
  0x10   :  { %3080 = dma.done.wait [#allocation3], 128  }
  0x11   :  { %3081 = vsyncadd [#allocation3], 4294967168 }
  0x12   :  { %3082 = dma.done.wait [#allocation5], 24576  }
  0x13   :  { %3083 = vsyncadd [#allocation5], 4294942720 }
  0x14   :  { %3084 = dma.done.wait [#allocation8], 96  }
  0x15   :  { %3085 = vsyncadd [#allocation8], 4294967200  ;;  %v109_v0 = vld [vmem:[%s3279_s1] sm:$0xff]  ;;  %vm155_vm0 = vcmask 1043456   ;;  %v110_v1 = vld [vmem:[%s3279_s1 + $0x8] sm:$0xff]  ;;  %vm151_vm1 = vcmask 64512  }
  0x16   :  { %v135_v2 = vunpack.c.l.b16 %v109_v0  ;;  %v136_v3 = vunpack.c.h.b16 %v109_v0  ;;  %v137_v4 = vunpack.c.l.b16 %v110_v1  ;;  %v138_v5 = vunpack.c.h.b16 %v110_v1  ;;  %v111_v6 = vld [vmem:[%s3279_s1 + $0x10] sm:$0xff]  ;;  %v112_v7 = vld [vmem:[%s3279_s1 + $0x18] sm:$0xff]  ;;  %v3178_v18 = vld [vmem:[%s3278_s0] sm:$0xf] }
  0x17   :  { %v139_v8 = vunpack.c.l.b16 %v111_v6  ;;  %v140_v9 = vunpack.c.h.b16 %v111_v6  ;;  %v141_v10 = vunpack.c.l.b16 %v112_v7  ;;  %v142_v11 = vunpack.c.h.b16 %v112_v7  ;;  %v2078_v16 = vld [vmem:[#allocation4 + $0xa8] sm:$0xf]  ;;  %v2782_v17 = vld [vmem:[#allocation4 + $0xb0] sm:$0xf0]  ;;  %v2066_v39 = vld [vmem:[#allocation4 + $0x90] sm:$0xf] }
  0x18   :  { %v143_v12 = vpack.c.b16 %v135_v2, %v135_v2  ;;  %v144_v13 = vpack.c.b16 %v136_v3, %v136_v3  ;;  %v145_v14 = vpack.c.b16 %v137_v4, %v137_v4  ;;  %v146_v15 = vpack.c.b16 %v138_v5, %v138_v5  ;;  %v2174_v23 = vld [vmem:[#allocation4 + $0x168] sm:$0xf]  ;;  %v2806_v24 = vld [vmem:[#allocation4 + $0x170] sm:$0xf0]  ;;  %v2779_v40 = vld [vmem:[#allocation4 + $0x98] sm:$0xf0] }
  0x19   :  { %v147_v19 = vpack.c.b16 %v139_v8, %v139_v8  ;;  %v148_v20 = vpack.c.b16 %v140_v9, %v140_v9  ;;  %v149_v21 = vpack.c.b16 %v141_v10, %v141_v10  ;;  %v150_v22 = vpack.c.b16 %v142_v11, %v142_v11  ;;  %v2270_v25 = vld [vmem:[#allocation4 + $0x228] sm:$0xf]  ;;  %v2830_v30 = vld [vmem:[#allocation4 + $0x230] sm:$0xf0]  ;;  %v2162_v41 = vld [vmem:[#allocation4 + $0x150] sm:$0xf] }
  0x1a   :  { %v157_v26 = vsel %vm155_vm0, %v143_v12, 0  ;;  %v160_v27 = vsel %vm155_vm0, %v144_v13, 0  ;;  %v163_v28 = vsel %vm155_vm0, %v145_v14, 0  ;;  %v166_v29 = vsel %vm155_vm0, %v146_v15, 0  ;;  %v2366_v33 = vld [vmem:[#allocation4 + $0x2e8] sm:$0xf] }
  0x1b   :  { %187 = vmatpush.bf16.msra.mxu0 %v157_v26  ;;  %200 = vmatpush.bf16.msra.mxu1 %v160_v27  ;;  %v169_v31 = vsel %vm155_vm0, %v147_v19, 0  ;;  %v172_v32 = vsel %vm155_vm0, %v148_v20, 0  ;;  %v2854_v34 = vld [vmem:[#allocation4 + $0x2f0] sm:$0xf0]  ;;  %v175_v35 = vsel %vm155_vm0, %v149_v21, 0  ;;  %v178_v36 = vsel %vm155_vm0, %v150_v22, 0 }
  0x1c   :  { %213 = vmatpush.bf16.msra.mxu2 %v163_v28  ;;  %226 = vmatpush.bf16.msra.mxu3 %v166_v29  ;;  %v2079_v37 = vor.u32 %v2782_v17, %v2078_v16  ;;  %v2175_v38 = vor.u32 %v2806_v24, %v2174_v23  ;;  %v2803_v42 = vld [vmem:[#allocation4 + $0x158] sm:$0xf0]  ;;  %v2271_v43 = vor.u32 %v2830_v30, %v2270_v25  ;;  %v2258_v45 = vld [vmem:[#allocation4 + $0x210] sm:$0xf]  ;;  %v2054_v51 = vld [vmem:[#allocation4 + $0x78] sm:$0xf] }
  0x1d   :  { %v2367_v44 = vor.u32 %v2854_v34, %v2366_v33  ;;  %v2827_v46 = vld [vmem:[#allocation4 + $0x218] sm:$0xf0]  ;;  %v2354_v47 = vld [vmem:[#allocation4 + $0x2d0] sm:$0xf]  ;;  %v2067_v49 = vor.u32 %v2779_v40, %v2066_v39  ;;  %v2163_v50 = vor.u32 %v2803_v42, %v2162_v41  ;;  %v2776_v52 = vld [vmem:[#allocation4 + $0x80] sm:$0xf0] }
  0x1e   :  { %1984 = vmatmul.msk.bf16.vlgmr.msra.gmra.mxu0 %vm151_vm1, %v3178_v18  ;;  %1985 = vmatmul.msk.bf16.vlgmr.msra.gmra.mxu1 %vm151_vm1, %v3178_v18  ;;  %v2851_v48 = vld [vmem:[#allocation4 + $0x2d8] sm:$0xf0]  ;;  %v2150_v53 = vld [vmem:[#allocation4 + $0x138] sm:$0xf]  ;;  %v2800_v54 = vld [vmem:[#allocation4 + $0x140] sm:$0xf0]  ;;  %v2259_v55 = vor.u32 %v2827_v46, %v2258_v45  ;;  %v2055_v61 = vor.u32 %v2776_v52, %v2054_v51 }
  0x1f   :  { %239 = vmatpush.bf16.msrb.mxu0 %v169_v31  ;;  %252 = vmatpush.bf16.msrb.mxu1 %v172_v32  ;;  %v2355_v56 = vor.u32 %v2851_v48, %v2354_v47  ;;  %v2246_v57 = vld [vmem:[#allocation4 + $0x1f8] sm:$0xf]  ;;  %v2824_v58 = vld [vmem:[#allocation4 + $0x200] sm:$0xf0]  ;;  %v2151_v62 = vor.u32 %v2800_v54, %v2150_v53  ;;  %v2042_v63 = vld [vmem:[#allocation4 + $0x60] sm:$0xf] }
  0x20   :  { %1986 = vmatmul.msk.bf16.vlgmr.msra.gmra.mxu2 %vm151_vm1, %v3178_v18  ;;  %1987 = vmatmul.msk.bf16.vlgmr.msra.gmra.mxu3 %vm151_vm1, %v3178_v18  ;;  %v2342_v59 = vld [vmem:[#allocation4 + $0x2b8] sm:$0xf]  ;;  %v2848_v60 = vld [vmem:[#allocation4 + $0x2c0] sm:$0xf0]  ;;  %v2773_v0 = vld [vmem:[#allocation4 + $0x68] sm:$0xf0]  ;;  %v2247_v3 = vor.u32 %v2824_v58, %v2246_v57 }
  0x21   :  { %265 = vmatpush.bf16.msrb.mxu2 %v175_v35  ;;  %278 = vmatpush.bf16.msrb.mxu3 %v178_v36  ;;  %v2138_v1 = vld [vmem:[#allocation4 + $0x120] sm:$0xf]  ;;  %v2797_v2 = vld [vmem:[#allocation4 + $0x128] sm:$0xf0]  ;;  %v2343_v4 = vor.u32 %v2848_v60, %v2342_v59  ;;  %v2030_v5 = vld [vmem:[#allocation4 + $0x48] sm:$0xf]  ;;  %v2043_v7 = vor.u32 %v2773_v0, %v2042_v63 }
  0x22   :  { %v2234_v6 = vld [vmem:[#allocation4 + $0x1e0] sm:$0xf]  ;;  %v2139_v8 = vor.u32 %v2797_v2, %v2138_v1  ;;  %v2821_v9 = vld [vmem:[#allocation4 + $0x1e8] sm:$0xf0]  ;;  %v2770_v12 = vld [vmem:[#allocation4 + $0x50] sm:$0xf0] }
  0x23   :  { %958 = vmatpush.bf16.msra.mxu0 %v2079_v37  ;;  %971 = vmatpush.bf16.msra.mxu1 %v2175_v38  ;;  %v2330_v10 = vld [vmem:[#allocation4 + $0x2a0] sm:$0xf]  ;;  %v2845_v11 = vld [vmem:[#allocation4 + $0x2a8] sm:$0xf0]  ;;  %v2126_v13 = vld [vmem:[#allocation4 + $0x108] sm:$0xf]  ;;  %v2235_v15 = vor.u32 %v2821_v9, %v2234_v6  ;;  %v2031_v20 = vor.u32 %v2770_v12, %v2030_v5 }
  0x24   :  { %v2794_v14 = vld [vmem:[#allocation4 + $0x110] sm:$0xf0]  ;;  %v2331_v16 = vor.u32 %v2845_v11, %v2330_v10  ;;  %v2018_v17 = vld [vmem:[#allocation4 + $0x30] sm:$0xf]  ;;  %v2222_v19 = vld [vmem:[#allocation4 + $0x1c8] sm:$0xf] }
  0x25   :  { %984 = vmatpush.bf16.msra.mxu2 %v2271_v43  ;;  %997 = vmatpush.bf16.msra.mxu3 %v2367_v44  ;;  %v2127_v21 = vor.u32 %v2794_v14, %v2126_v13  ;;  %v2818_v22 = vld [vmem:[#allocation4 + $0x1d0] sm:$0xf0]  ;;  %v2318_v23 = vld [vmem:[#allocation4 + $0x288] sm:$0xf]  ;;  %v2767_v25 = vld [vmem:[#allocation4 + $0x38] sm:$0xf0] }
  0x26   :  { %v2842_v24 = vld [vmem:[#allocation4 + $0x290] sm:$0xf0]  ;;  %v2114_v26 = vld [vmem:[#allocation4 + $0xf0] sm:$0xf]  ;;  %v2791_v27 = vld [vmem:[#allocation4 + $0xf8] sm:$0xf0]  ;;  %v2223_v28 = vor.u32 %v2818_v22, %v2222_v19  ;;  %v2019_v32 = vor.u32 %v2767_v25, %v2018_v17 }
  0x27   :  { %959 = vmatpush.bf16.msra.mxu0 %v2067_v49  ;;  %972 = vmatpush.bf16.msra.mxu1 %v2163_v50  ;;  %v2319_v29 = vor.u32 %v2842_v24, %v2318_v23  ;;  %v2006_v30 = vld [vmem:[#allocation4 + $0x18] sm:$0xf]  ;;  %v2210_v31 = vld [vmem:[#allocation4 + $0x1b0] sm:$0xf]  ;;  %v2115_v33 = vor.u32 %v2791_v27, %v2114_v26  ;;  %v2815_v34 = vld [vmem:[#allocation4 + $0x1b8] sm:$0xf0] }
  0x28   :  { %v2306_v35 = vld [vmem:[#allocation4 + $0x270] sm:$0xf]  ;;  %v2839_v36 = vld [vmem:[#allocation4 + $0x278] sm:$0xf0]  ;;  %v2764_v37 = vld [vmem:[#allocation4 + $0x20] sm:$0xf0]  ;;  %v2211_v40 = vor.u32 %v2815_v34, %v2210_v31 }
  0x29   :  { %985 = vmatpush.bf16.msra.mxu2 %v2259_v55  ;;  %998 = vmatpush.bf16.msra.mxu3 %v2355_v56  ;;  %v2102_v38 = vld [vmem:[#allocation4 + $0xd8] sm:$0xf]  ;;  %v2788_v39 = vld [vmem:[#allocation4 + $0xe0] sm:$0xf0]  ;;  %v1994_v41 = vld [vmem:[#allocation4] sm:$0xf]  ;;  %v2007_v44 = vor.u32 %v2764_v37, %v2006_v30 }
  0x2a   :  { %v2761_v42 = vld [vmem:[#allocation4 + $0x8] sm:$0xf0]  ;;  %v2198_v43 = vld [vmem:[#allocation4 + $0x198] sm:$0xf]  ;;  %v2103_v45 = vor.u32 %v2788_v39, %v2102_v38  ;;  %v2812_v46 = vld [vmem:[#allocation4 + $0x1a0] sm:$0xf0] }
  0x2b   :  { %960 = vmatpush.bf16.msra.mxu0 %v2055_v61  ;;  %973 = vmatpush.bf16.msra.mxu1 %v2151_v62  ;;  %v2294_v47 = vld [vmem:[#allocation4 + $0x258] sm:$0xf]  ;;  %v2836_v48 = vld [vmem:[#allocation4 + $0x260] sm:$0xf0]  ;;  %v2090_v49 = vld [vmem:[#allocation4 + $0xc0] sm:$0xf]  ;;  %v2199_v55 = vor.u32 %v2812_v46, %v2198_v43  ;;  %v1995_v59 = vor.u32 %v2761_v42, %v1994_v41 }
  0x2c   :  { %v2785_v50 = vld [vmem:[#allocation4 + $0xc8] sm:$0xf0]  ;;  %v2080_v52 = vld [vmem:[#allocation4 + $0xb4] sm:$0xf0]  ;;  %v2295_v56 = vor.u32 %v2836_v48, %v2294_v47  ;;  %v2186_v57 = vld [vmem:[#allocation4 + $0x180] sm:$0xf] }
  0x2d   :  { %986 = vmatpush.bf16.msra.mxu2 %v2247_v3  ;;  %999 = vmatpush.bf16.msra.mxu3 %v2343_v4  ;;  %v2781_v51 = vld [vmem:[#allocation4 + $0xac] sm:$0xf]  ;;  %v2176_v54 = vld [vmem:[#allocation4 + $0x174] sm:$0xf0]  ;;  %v2091_v60 = vor.u32 %v2785_v50, %v2090_v49  ;;  %v2778_v61 = vld [vmem:[#allocation4 + $0x94] sm:$0xf] }
  0x2e   :  { %1988 = vmatmul.msk.bf16.vlgmr.msrb.gmra.mxu0 %vm151_vm1, %v3178_v18  ;;  %1989 = vmatmul.msk.bf16.vlgmr.msrb.gmra.mxu1 %vm151_vm1, %v3178_v18  ;;  %v2805_v53 = vld [vmem:[#allocation4 + $0x16c] sm:$0xf]  ;;  %v2282_v62 = vld [vmem:[#allocation4 + $0x240] sm:$0xf]  ;;  %v2083_v1 = vor.u32 %v2781_v51, %v2080_v52  ;;  %v2272_v3 = vld [vmem:[#allocation4 + $0x234] sm:$0xf0] }
  0x2f   :  { %961 = vmatpush.bf16.msra.mxu0 %v2043_v7  ;;  %974 = vmatpush.bf16.msra.mxu1 %v2139_v8  ;;  %v2809_v58 = vld [vmem:[#allocation4 + $0x188] sm:$0xf0]  ;;  %v2179_v2 = vor.u32 %v2805_v53, %v2176_v54  ;;  %v2368_v5 = vld [vmem:[#allocation4 + $0x2f4] sm:$0xf0]  ;;  %v2068_v6 = vld [vmem:[#allocation4 + $0x9c] sm:$0xf0] }
  0x30   :  { %1990 = vmatmul.msk.bf16.vlgmr.msrb.gmra.mxu2 %vm151_vm1, %v3178_v18  ;;  %1991 = vmatmul.msk.bf16.vlgmr.msrb.gmra.mxu3 %vm151_vm1, %v3178_v18  ;;  %v2307_v18 = vor.u32 %v2839_v36, %v2306_v35  ;;  %v2833_v63 = vld [vmem:[#allocation4 + $0x248] sm:$0xf0]  ;;  %v2802_v7 = vld [vmem:[#allocation4 + $0x154] sm:$0xf]  ;;  %v2164_v8 = vld [vmem:[#allocation4 + $0x15c] sm:$0xf0]  ;;  %v2187_v9 = vor.u32 %v2809_v58, %v2186_v57 }
  0x31   :  { %987 = vmatpush.bf16.msra.mxu2 %v2235_v15  ;;  %1000 = vmatpush.bf16.msra.mxu3 %v2331_v16  ;;  %v2829_v0 = vld [vmem:[#allocation4 + $0x22c] sm:$0xf]  ;;  %v2283_v10 = vor.u32 %v2833_v63, %v2282_v62  ;;  %v2775_v13 = vld [vmem:[#allocation4 + $0x7c] sm:$0xf]  ;;  %v2826_v14 = vld [vmem:[#allocation4 + $0x214] sm:$0xf]  ;;  %v2071_v15 = vor.u32 %v2778_v61, %v2068_v6  ;;  %v2167_v16 = vor.u32 %v2802_v7, %v2164_v8 }
  0x32   :  { %v2853_v4 = vld [vmem:[#allocation4 + $0x2ec] sm:$0xf]  ;;  %v2275_v11 = vor.u32 %v2829_v0, %v2272_v3  ;;  %v2260_v17 = vld [vmem:[#allocation4 + $0x21c] sm:$0xf0]  ;;  %v2850_v19 = vld [vmem:[#allocation4 + $0x2d4] sm:$0xf] }
  0x33   :  { %962 = vmatpush.bf16.msra.mxu0 %v2031_v20  ;;  %975 = vmatpush.bf16.msra.mxu1 %v2127_v21  ;;  %v2371_v12 = vor.u32 %v2853_v4, %v2368_v5  ;;  %v2356_v20 = vld [vmem:[#allocation4 + $0x2dc] sm:$0xf0]  ;;  %v2056_v21 = vld [vmem:[#allocation4 + $0x84] sm:$0xf0]  ;;  %v2799_v22 = vld [vmem:[#allocation4 + $0x13c] sm:$0xf]  ;;  %v2263_v24 = vor.u32 %v2826_v14, %v2260_v17 }
  0x34   :  { %v2152_v23 = vld [vmem:[#allocation4 + $0x144] sm:$0xf0]  ;;  %v2359_v25 = vor.u32 %v2850_v19, %v2356_v20  ;;  %v2772_v26 = vld [vmem:[#allocation4 + $0x64] sm:$0xf]  ;;  %v2823_v27 = vld [vmem:[#allocation4 + $0x1fc] sm:$0xf] }
  0x35   :  { %988 = vmatpush.bf16.msra.mxu2 %v2223_v28  ;;  %1001 = vmatpush.bf16.msra.mxu3 %v2319_v29  ;;  %v2059_v28 = vor.u32 %v2775_v13, %v2056_v21  ;;  %v2155_v29 = vor.u32 %v2799_v22, %v2152_v23  ;;  %v2248_v30 = vld [vmem:[#allocation4 + $0x204] sm:$0xf0]  ;;  %v2847_v31 = vld [vmem:[#allocation4 + $0x2bc] sm:$0xf]  ;;  %v2796_v34 = vld [vmem:[#allocation4 + $0x124] sm:$0xf] }
  0x36   :  { %v2140_v35 = vld [vmem:[#allocation4 + $0x12c] sm:$0xf0]  ;;  %v2251_v36 = vor.u32 %v2823_v27, %v2248_v30  ;;  %v2793_v41 = vld [vmem:[#allocation4 + $0x10c] sm:$0xf]  ;;  %v2128_v42 = vld [vmem:[#allocation4 + $0x114] sm:$0xf0] }
  0x37   :  { %963 = vmatpush.bf16.msra.mxu0 %v2019_v32  ;;  %976 = vmatpush.bf16.msra.mxu1 %v2115_v33  ;;  %v2344_v32 = vld [vmem:[#allocation4 + $0x2c4] sm:$0xf0]  ;;  %v2044_v33 = vld [vmem:[#allocation4 + $0x6c] sm:$0xf0]  ;;  %v2143_v39 = vor.u32 %v2796_v34, %v2140_v35  ;;  %v2844_v47 = vld [vmem:[#allocation4 + $0x2a4] sm:$0xf] }
  0x38   :  { %v2347_v37 = vor.u32 %v2847_v31, %v2344_v32  ;;  %v2047_v38 = vor.u32 %v2772_v26, %v2044_v33  ;;  %v2236_v46 = vld [vmem:[#allocation4 + $0x1ec] sm:$0xf0]  ;;  %v2766_v51 = vld [vmem:[#allocation4 + $0x34] sm:$0xf]  ;;  %v2020_v52 = vld [vmem:[#allocation4 + $0x3c] sm:$0xf0] }
  0x39   :  { %989 = vmatpush.bf16.msra.mxu2 %v2211_v40  ;;  %1002 = vmatpush.bf16.msra.mxu3 %v2307_v18  ;;  %v2769_v40 = vld [vmem:[#allocation4 + $0x4c] sm:$0xf]  ;;  %v2032_v18 = vld [vmem:[#allocation4 + $0x54] sm:$0xf0]  ;;  %v2332_v49 = vld [vmem:[#allocation4 + $0x2ac] sm:$0xf0]  ;;  %v2023_v53 = vor.u32 %v2766_v51, %v2020_v52 }
  0x3a   :  { %v2035_v43 = vor.u32 %v2769_v40, %v2032_v18  ;;  %v2335_v50 = vor.u32 %v2844_v47, %v2332_v49  ;;  %v2790_v54 = vld [vmem:[#allocation4 + $0xf4] sm:$0xf]  ;;  %v2817_v57 = vld [vmem:[#allocation4 + $0x1cc] sm:$0xf]  ;;  %v2224_v58 = vld [vmem:[#allocation4 + $0x1d4] sm:$0xf0] }
  0x3b   :  { %964 = vmatpush.bf16.msra.mxu0 %v2007_v44  ;;  %977 = vmatpush.bf16.msra.mxu1 %v2103_v45  ;;  %v2131_v44 = vor.u32 %v2793_v41, %v2128_v42  ;;  %v2820_v45 = vld [vmem:[#allocation4 + $0x1e4] sm:$0xf]  ;;  %v2320_v61 = vld [vmem:[#allocation4 + $0x294] sm:$0xf0]  ;;  %v2763_v63 = vld [vmem:[#allocation4 + $0x1c] sm:$0xf] }
  0x3c   :  { %v2239_v48 = vor.u32 %v2820_v45, %v2236_v46  ;;  %v2008_v0 = vld [vmem:[#allocation4 + $0x24] sm:$0xf0]  ;;  %v2814_v5 = vld [vmem:[#allocation4 + $0x1b4] sm:$0xf]  ;;  %v2212_v6 = vld [vmem:[#allocation4 + $0x1bc] sm:$0xf0] }
  0x3d   :  { %990 = vmatpush.bf16.msra.mxu2 %v2199_v55  ;;  %1003 = vmatpush.bf16.msra.mxu3 %v2295_v56  ;;  %v2116_v55 = vld [vmem:[#allocation4 + $0xfc] sm:$0xf0]  ;;  %v2104_v3 = vld [vmem:[#allocation4 + $0xe4] sm:$0xf0]  ;;  %v2215_v7 = vor.u32 %v2814_v5, %v2212_v6  ;;  %v2838_v8 = vld [vmem:[#allocation4 + $0x274] sm:$0xf] }
  0x3e   :  { %v2119_v56 = vor.u32 %v2790_v54, %v2116_v55  ;;  %v2784_v13 = vld [vmem:[#allocation4 + $0xc4] sm:$0xf]  ;;  %v2811_v17 = vld [vmem:[#allocation4 + $0x19c] sm:$0xf]  ;;  %v2200_v19 = vld [vmem:[#allocation4 + $0x1a4] sm:$0xf0] }
  0x3f   :  { %965 = vmatpush.bf16.msra.mxu0 %v1995_v59  ;;  %978 = vmatpush.bf16.msra.mxu1 %v2091_v60  ;;  %v2841_v59 = vld [vmem:[#allocation4 + $0x28c] sm:$0xf]  ;;  %v2227_v60 = vor.u32 %v2817_v57, %v2224_v58  ;;  %v2835_v20 = vld [vmem:[#allocation4 + $0x25c] sm:$0xf]  ;;  %v2296_v21 = vld [vmem:[#allocation4 + $0x264] sm:$0xf0]  ;;  %v2203_v22 = vor.u32 %v2811_v17, %v2200_v19 }
  0x40   :  { %v2323_v62 = vor.u32 %v2841_v59, %v2320_v61  ;;  %v2299_v23 = vor.u32 %v2835_v20, %v2296_v21  ;;  %v2832_v27 = vld [vmem:[#allocation4 + $0x244] sm:$0xf]  ;;  %v3204_v30 = vld [vmem:[#allocation2] sm:$0xff]  ;;  %v2086_v18 = vld [vmem:[#allocation4 + $0xb0] sm:$0xf]  ;;  %vm1968_vm2 = vcmask 7168  }
  0x41   :  { %991 = vmatpush.bf16.msra.mxu2 %v2187_v9  ;;  %1004 = vmatpush.bf16.msra.mxu3 %v2283_v10  ;;  %v2308_v9 = vld [vmem:[#allocation4 + $0x27c] sm:$0xf0]  ;;  %v115_v31 = vperm.slane %v3204_v30, 0  ;;  %v116_v32 = vperm.slane %v3204_v30, 1  ;;  %v118_v40 = vperm.slane %v3204_v30, 3  ;;  %vm1975_vm3 = vcmask 15360  }
  0x42   :  { %v2311_v10 = vor.u32 %v2838_v8, %v2308_v9  ;;  %v2783_v42 = vld [vmem:[#allocation4 + $0xb8] sm:$0xf0]  ;;  %v2074_v55 = vld [vmem:[#allocation4 + $0x98] sm:$0xf]  ;;  %v2780_v58 = vld [vmem:[#allocation4 + $0xa0] sm:$0xf0] }
  0x43   :  { %1010 = vmatpush.bf16.msrb.mxu0 %v2083_v1  ;;  %1023 = vmatpush.bf16.msrb.mxu1 %v2179_v2  ;;  %v2787_v1 = vld [vmem:[#allocation4 + $0xdc] sm:$0xf]  ;;  %v2011_v2 = vor.u32 %v2763_v63, %v2008_v0  ;;  %v2170_v59 = vld [vmem:[#allocation4 + $0x158] sm:$0xf]  ;;  %v2278_v63 = vld [vmem:[#allocation4 + $0x230] sm:$0xf] }
  0x44   :  { %v2107_v4 = vor.u32 %v2787_v1, %v2104_v3  ;;  %v2831_v0 = vld [vmem:[#allocation4 + $0x238] sm:$0xf0]  ;;  %v2374_v1 = vld [vmem:[#allocation4 + $0x2f0] sm:$0xf]  ;;  %v2075_v3 = vor.u32 %v2780_v58, %v2074_v55  ;;  %v2062_v6 = vld [vmem:[#allocation4 + $0x80] sm:$0xf] }
  0x45   :  { %1036 = vmatpush.bf16.msrb.mxu2 %v2275_v11  ;;  %1049 = vmatpush.bf16.msrb.mxu3 %v2371_v12  ;;  %v2760_v11 = vld [vmem:[#allocation4 + $0x4] sm:$0xf]  ;;  %v1996_v12 = vld [vmem:[#allocation4 + $0xc] sm:$0xf0]  ;;  %v2855_v5 = vld [vmem:[#allocation4 + $0x2f8] sm:$0xf0] }
  0x46   :  { %v1999_v14 = vor.u32 %v2760_v11, %v1996_v12  ;;  %v2158_v8 = vld [vmem:[#allocation4 + $0x140] sm:$0xf]  ;;  %v2801_v9 = vld [vmem:[#allocation4 + $0x148] sm:$0xf0]  ;;  %v2266_v17 = vld [vmem:[#allocation4 + $0x218] sm:$0xf] }
  0x47   :  { %1011 = vmatpush.bf16.msrb.mxu0 %v2071_v15  ;;  %1024 = vmatpush.bf16.msrb.mxu1 %v2167_v16  ;;  %v2092_v15 = vld [vmem:[#allocation4 + $0xcc] sm:$0xf0]  ;;  %v2828_v19 = vld [vmem:[#allocation4 + $0x220] sm:$0xf0]  ;;  %v2819_v58 = vld [vmem:[#allocation4 + $0x1d8] sm:$0xf0] }
  0x48   :  { %v2095_v16 = vor.u32 %v2784_v13, %v2092_v15  ;;  %v2375_v15 = vor.u32 %v2855_v5, %v2374_v1  ;;  %v2230_v55 = vld [vmem:[#allocation4 + $0x1d0] sm:$0xf]  ;;  %v2110_v1 = vld [vmem:[#allocation4 + $0xe0] sm:$0xf]  ;;  %v2218_v5 = vld [vmem:[#allocation4 + $0x1b8] sm:$0xf] }
  0x49   :  { %1037 = vmatpush.bf16.msrb.mxu2 %v2263_v24  ;;  %1050 = vmatpush.bf16.msrb.mxu3 %v2359_v25  ;;  %v2808_v24 = vld [vmem:[#allocation4 + $0x184] sm:$0xf]  ;;  %v2188_v25 = vld [vmem:[#allocation4 + $0x18c] sm:$0xf0] }
  0x4a   :  { %v2191_v26 = vor.u32 %v2808_v24, %v2188_v25  ;;  %v2852_v24 = vld [vmem:[#allocation4 + $0x2e0] sm:$0xf0]  ;;  %v2050_v25 = vld [vmem:[#allocation4 + $0x68] sm:$0xf] }
  0x4b   :  { %1012 = vmatpush.bf16.msrb.mxu0 %v2059_v28  ;;  %1025 = vmatpush.bf16.msrb.mxu1 %v2155_v29  ;;  %v2284_v28 = vld [vmem:[#allocation4 + $0x24c] sm:$0xf0] }
  0x4c   :  { %v2287_v29 = vor.u32 %v2832_v27, %v2284_v28  ;;  %v2146_v27 = vld [vmem:[#allocation4 + $0x128] sm:$0xf]  ;;  %v2798_v28 = vld [vmem:[#allocation4 + $0x130] sm:$0xf0] }
  0x4d   :  { %1038 = vmatpush.bf16.msrb.mxu2 %v2251_v36  ;;  %1051 = vmatpush.bf16.msrb.mxu3 %v2347_v37 }
  0x4f   :  { %1013 = vmatpush.bf16.msrb.mxu0 %v2047_v38  ;;  %1026 = vmatpush.bf16.msrb.mxu1 %v2143_v39  ;;  %v117_v39 = vperm.slane %v3204_v30, 2 }
  0x51   :  { %1039 = vmatpush.bf16.msrb.mxu2 %v2239_v48  ;;  %1052 = vmatpush.bf16.msrb.mxu3 %v2335_v50 }
  0x53   :  { %1014 = vmatpush.bf16.msrb.mxu0 %v2035_v43  ;;  %1027 = vmatpush.bf16.msrb.mxu1 %v2131_v44  ;;  %v2182_v43 = vld [vmem:[#allocation4 + $0x170] sm:$0xf]  ;;  %v2807_v44 = vld [vmem:[#allocation4 + $0x178] sm:$0xf0] }
  0x54   :  { %v2183_v54 = vor.u32 %v2807_v44, %v2182_v43  ;;  %v2242_v43 = vld [vmem:[#allocation4 + $0x1e8] sm:$0xf]  ;;  %v2822_v44 = vld [vmem:[#allocation4 + $0x1f0] sm:$0xf0] }
  0x55   :  { %1040 = vmatpush.bf16.msrb.mxu2 %v2227_v60  ;;  %1053 = vmatpush.bf16.msrb.mxu3 %v2323_v62  ;;  %v2804_v60 = vld [vmem:[#allocation4 + $0x160] sm:$0xf0] }
  0x57   :  { %1015 = vmatpush.bf16.msrb.mxu0 %v2023_v53  ;;  %1028 = vmatpush.bf16.msrb.mxu1 %v2119_v56  ;;  %v2087_v53 = vor.u32 %v2783_v42, %v2086_v18  ;;  %v2795_v18 = vld [vmem:[#allocation4 + $0x118] sm:$0xf0] }
  0x59   :  { %1041 = vmatpush.bf16.msrb.mxu2 %v2215_v7  ;;  %1054 = vmatpush.bf16.msrb.mxu3 %v2311_v10  ;;  %v2777_v7 = vld [vmem:[#allocation4 + $0x88] sm:$0xf0] }
  0x5b   :  { %1016 = vmatpush.bf16.msrb.mxu0 %v2011_v2  ;;  %1029 = vmatpush.bf16.msrb.mxu1 %v2107_v4  ;;  %v2171_v4 = vor.u32 %v2804_v60, %v2170_v59  ;;  %v2326_v59 = vld [vmem:[#allocation4 + $0x290] sm:$0xf]  ;;  %v2843_v60 = vld [vmem:[#allocation4 + $0x298] sm:$0xf0] }
  0x5d   :  { %1042 = vmatpush.bf16.msrb.mxu2 %v2203_v22  ;;  %1055 = vmatpush.bf16.msrb.mxu3 %v2299_v23  ;;  %v2159_v22 = vor.u32 %v2801_v9, %v2158_v8  ;;  %v2362_v23 = vld [vmem:[#allocation4 + $0x2d8] sm:$0xf]  ;;  %v2840_v8 = vld [vmem:[#allocation4 + $0x280] sm:$0xf0] }
  0x5f   :  { %1017 = vmatpush.bf16.msrb.mxu0 %v1999_v14  ;;  %1030 = vmatpush.bf16.msrb.mxu1 %v2095_v16  ;;  %v2279_v14 = vor.u32 %v2831_v0, %v2278_v63  ;;  %v2063_v16 = vor.u32 %v2777_v7, %v2062_v6  ;;  %v2014_v63 = vld [vmem:[#allocation4 + $0x20] sm:$0xf]  ;;  %v2765_v0 = vld [vmem:[#allocation4 + $0x28] sm:$0xf0]  ;;  %v2816_v6 = vld [vmem:[#allocation4 + $0x1c0] sm:$0xf0] }
  0x60   :  { %v2314_v7 = vld [vmem:[#allocation4 + $0x278] sm:$0xf]  ;;  %v2015_v9 = vor.u32 %v2765_v0, %v2014_v63  ;;  %v2947_v63 = vld [vmem:[#allocation6 + $0x2d8] sm:$0xf0] }
  0x61   :  { %1043 = vmatpush.bf16.msrb.mxu2 %v2191_v26  ;;  %1056 = vmatpush.bf16.msrb.mxu3 %v2287_v29  ;;  %v2774_v26 = vld [vmem:[#allocation4 + $0x70] sm:$0xf0]  ;;  %v2267_v29 = vor.u32 %v2828_v19, %v2266_v17  ;;  %v2219_v17 = vor.u32 %v2816_v6, %v2218_v5  ;;  %v2315_v19 = vor.u32 %v2840_v8, %v2314_v7  ;;  %v2893_v5 = vld [vmem:[#allocation6 + $0x128] sm:$0xf0]  ;;  %v2630_v8 = vld [vmem:[#allocation6 + $0x1f8] sm:$0xf] }
  0x9b   :  { %v189_v33 = vpop.f32.mrf.mxu0  ;;  %v202_v34 = vpop.f32.mrf.mxu1 }
  0x9c   :  { %v190_v35 = vadd.f32 %v189_v33, %v115_v31  ;;  %v203_v36 = vadd.f32 %v202_v34, %v116_v32  ;;  %v2363_v31 = vor.u32 %v2852_v24, %v2362_v23  ;;  %v2254_v32 = vld [vmem:[#allocation4 + $0x200] sm:$0xf]  ;;  %v2051_v33 = vor.u32 %v2774_v26, %v2050_v25  ;;  %v2902_v23 = vld [vmem:[#allocation6 + $0x170] sm:$0xf0]  ;;  %v2813_v25 = vld [vmem:[#allocation4 + $0x1a8] sm:$0xf0] }
  0x9d   :  { %v2147_v34 = vor.u32 %v2798_v28, %v2146_v27  ;;  %v2206_v24 = vld [vmem:[#allocation4 + $0x1a0] sm:$0xf]  ;;  %v2837_v27 = vld [vmem:[#allocation4 + $0x268] sm:$0xf0] }
  0x9e   :  { %v284_v37 = vmax.f32 %v190_v35, 0.0  ;;  %v285_v38 = vmax.f32 %v203_v36, 0.0  ;;  %v2825_v35 = vld [vmem:[#allocation4 + $0x208] sm:$0xf0]  ;;  %v2350_v36 = vld [vmem:[#allocation4 + $0x2c0] sm:$0xf] }
  0x9f   :  { %v2302_v26 = vld [vmem:[#allocation4 + $0x260] sm:$0xf] }
  0xa0   :  { %v292_v41 = vpack.c.bf16 %v285_v38, %v284_v37  ;;  %v2849_v37 = vld [vmem:[#allocation4 + $0x2c8] sm:$0xf0]  ;;  %v2038_v38 = vld [vmem:[#allocation4 + $0x50] sm:$0xf] }
  0xa1   :  { %v2351_v42 = vor.u32 %v2849_v37, %v2350_v36  ;;  %v2207_v36 = vor.u32 %v2813_v25, %v2206_v24  ;;  %v2303_v37 = vor.u32 %v2837_v27, %v2302_v26  ;;  %v2890_v24 = vld [vmem:[#allocation6 + $0x110] sm:$0xf0]  ;;  %v2618_v27 = vld [vmem:[#allocation6 + $0x1e0] sm:$0xf] }
  0xa2   :  { %v434_v45 = vunpack.c.l.b16 %v292_v41  ;;  %v435_v46 = vunpack.c.h.b16 %v292_v41  ;;  %v2255_v41 = vor.u32 %v2825_v35, %v2254_v32  ;;  %v2546_v35 = vld [vmem:[#allocation6 + $0x150] sm:$0xf] }
  0xa3   :  { %v215_v47 = vpop.f32.mrf.mxu2  ;;  %v228_v48 = vpop.f32.mrf.mxu3 }
  0xa4   :  { %v216_v49 = vadd.f32 %v215_v47, %v117_v39  ;;  %v229_v50 = vadd.f32 %v228_v48, %v118_v40  ;;  %v191_v51 = vpop.f32.mrf.mxu0  ;;  %v204_v52 = vpop.f32.mrf.mxu1  ;;  %v3210_v56 = vpack.c.b16 %v434_v45, %v434_v45  ;;  %v3212_v57 = vpack.c.b16 %v435_v46, %v435_v46  ;;  %v2771_v39 = vld [vmem:[#allocation4 + $0x58] sm:$0xf0]  ;;  %v2134_v40 = vld [vmem:[#allocation4 + $0x110] sm:$0xf]  ;;  %v2338_v45 = vld [vmem:[#allocation4 + $0x2a8] sm:$0xf] }
  0xa5   :  { %v2846_v46 = vld [vmem:[#allocation4 + $0x2b0] sm:$0xf0]  ;;  %v2039_v47 = vor.u32 %v2771_v39, %v2038_v38  ;;  %v2135_v48 = vor.u32 %v2795_v18, %v2134_v40  ;;  %v2122_v51 = vld [vmem:[#allocation4 + $0xf8] sm:$0xf]  ;;  %v2792_v52 = vld [vmem:[#allocation4 + $0x100] sm:$0xf0] }
  0xa6   :  { %v286_v61 = vmax.f32 %v216_v49, 0.0  ;;  %v287_v62 = vmax.f32 %v229_v50, 0.0  ;;  %966 = vmatmul.bf16.vlgmr.msra.gmra.mxu0 %v3210_v56  ;;  %979 = vmatmul.bf16.vlgmr.msra.gmra.mxu1 %v3212_v57  ;;  %v2026_v49 = vld [vmem:[#allocation4 + $0x38] sm:$0xf]  ;;  %v2768_v50 = vld [vmem:[#allocation4 + $0x40] sm:$0xf0] }
  0xa7   :  { %1062 = vmatpush.bf16.msra.mxu0 %v2087_v53  ;;  %1075 = vmatpush.bf16.msra.mxu1 %v2183_v54  ;;  %v2243_v53 = vor.u32 %v2822_v44, %v2242_v43  ;;  %v2339_v54 = vor.u32 %v2846_v46, %v2338_v45  ;;  %v2899_v38 = vld [vmem:[#allocation6 + $0x158] sm:$0xf0]  ;;  %v2194_v39 = vld [vmem:[#allocation4 + $0x188] sm:$0xf]  ;;  %v2810_v40 = vld [vmem:[#allocation4 + $0x190] sm:$0xf0] }
  0xa8   :  { %v293_v2 = vpack.c.bf16 %v287_v62, %v286_v61  ;;  %v2027_v61 = vor.u32 %v2768_v50, %v2026_v49  ;;  %v2123_v62 = vor.u32 %v2792_v52, %v2122_v51  ;;  %v2290_v18 = vld [vmem:[#allocation4 + $0x248] sm:$0xf]  ;;  %v2926_v45 = vld [vmem:[#allocation6 + $0x230] sm:$0xf0]  ;;  %v2547_v49 = vor.u32 %v2899_v38, %v2546_v35  ;;  %v2438_v50 = vld [vmem:[#allocation6 + $0x78] sm:$0xf] }
  0xa9   :  { %v2750_v46 = vld [vmem:[#allocation6 + $0x2e8] sm:$0xf]  ;;  %v2195_v51 = vor.u32 %v2810_v40, %v2194_v39  ;;  %v2863_v35 = vld [vmem:[#allocation6 + $0x38] sm:$0xf0] }
  0xaa   :  { %v436_v10 = vunpack.c.l.b16 %v293_v2  ;;  %v437_v11 = vunpack.c.h.b16 %v293_v2  ;;  %v2789_v2 = vld [vmem:[#allocation4 + $0xe8] sm:$0xf0] }
  0xab   :  { %v217_v12 = vpop.f32.mrf.mxu2  ;;  %v230_v13 = vpop.f32.mrf.mxu3  ;;  %1063 = vmatpush.bf16.msra.mxu0 %v2075_v3  ;;  %1076 = vmatpush.bf16.msra.mxu1 %v2171_v4  ;;  %v2231_v3 = vor.u32 %v2819_v58, %v2230_v55  ;;  %v2327_v4 = vor.u32 %v2843_v60, %v2326_v59  ;;  %v2896_v55 = vld [vmem:[#allocation6 + $0x140] sm:$0xf0]  ;;  %v2642_v60 = vld [vmem:[#allocation6 + $0x210] sm:$0xf] }
  0xac   :  { %v3216_v20 = vpack.c.b16 %v436_v10, %v436_v10  ;;  %v3218_v21 = vpack.c.b16 %v437_v11, %v437_v11  ;;  %v2111_v10 = vor.u32 %v2789_v2, %v2110_v1  ;;  %v2002_v11 = vld [vmem:[#allocation4 + $0x8] sm:$0xf]  ;;  %v2762_v12 = vld [vmem:[#allocation4 + $0x10] sm:$0xf0]  ;;  %v3226_v43 = vpop.f32.mrf.mxu0  ;;  %v3228_v44 = vpop.f32.mrf.mxu1  ;;  %v2426_v2 = vld [vmem:[#allocation6 + $0x60] sm:$0xf] }
  0xad   :  { %v2098_v13 = vld [vmem:[#allocation4 + $0xc8] sm:$0xf]  ;;  %v2003_v28 = vor.u32 %v2762_v12, %v2002_v11  ;;  %v2726_v12 = vld [vmem:[#allocation6 + $0x2b8] sm:$0xf] }
  0xae   :  { %992 = vmatmul.bf16.vlgmr.msra.gmra.mxu2 %v3216_v20  ;;  %1005 = vmatmul.bf16.vlgmr.msra.gmra.mxu3 %v3218_v21 }
  0xaf   :  { %1088 = vmatpush.bf16.msra.mxu2 %v2279_v14  ;;  %1101 = vmatpush.bf16.msra.mxu3 %v2375_v15  ;;  %v2786_v14 = vld [vmem:[#allocation4 + $0xd0] sm:$0xf0]  ;;  %v2462_v15 = vld [vmem:[#allocation6 + $0xa8] sm:$0xf] }
  0xb0   :  { %1064 = vmatpush.bf16.msra.mxu0 %v2063_v16  ;;  %1077 = vmatpush.bf16.msra.mxu1 %v2159_v22  ;;  %v2878_v16 = vld [vmem:[#allocation6 + $0xb0] sm:$0xf0]  ;;  %v2558_v22 = vld [vmem:[#allocation6 + $0x168] sm:$0xf] }
  0xb1   :  { %v2559_v32 = vor.u32 %v2902_v23, %v2558_v22  ;;  %v2866_v22 = vld [vmem:[#allocation6 + $0x50] sm:$0xf0]  ;;  %v2510_v23 = vld [vmem:[#allocation6 + $0x108] sm:$0xf] }
  0xb3   :  { %1089 = vmatpush.bf16.msra.mxu2 %v2267_v29  ;;  %1102 = vmatpush.bf16.msra.mxu3 %v2363_v31  ;;  %v2099_v29 = vor.u32 %v2786_v14, %v2098_v13  ;;  %v2463_v31 = vor.u32 %v2878_v16, %v2462_v15  ;;  %v3232_v6 = vpop.f32.mrf.mxu2  ;;  %v2944_v13 = vld [vmem:[#allocation6 + $0x2c0] sm:$0xf0]  ;;  %v119_v14 = vperm.slane %v3204_v30, 4  ;;  %v120_v15 = vperm.slane %v3204_v30, 5 }
  0xb4   :  { %1065 = vmatpush.bf16.msra.mxu0 %v2051_v33  ;;  %1078 = vmatpush.bf16.msra.mxu1 %v2147_v34  ;;  %v2450_v33 = vld [vmem:[#allocation6 + $0x90] sm:$0xf]  ;;  %v2875_v34 = vld [vmem:[#allocation6 + $0x98] sm:$0xf0]  ;;  %v256_v11 = vpop.f32.mrf.mxu1  ;;  %v2727_v26 = vor.u32 %v2944_v13, %v2726_v12 }
  0xb5   :  { %v2560_v11 = vld [vmem:[#allocation6 + $0x174] sm:$0xf0] }
  0xb6   :  { %1018 = vmatmul.bf16.vlgmr.msrb.gmra.mxu0 %v3210_v56  ;;  %1031 = vmatmul.bf16.vlgmr.msrb.gmra.mxu1 %v3212_v57 }
  0xb7   :  { %1090 = vmatpush.bf16.msra.mxu2 %v2255_v41  ;;  %1103 = vmatpush.bf16.msra.mxu3 %v2351_v42  ;;  %v2834_v41 = vld [vmem:[#allocation4 + $0x250] sm:$0xf0]  ;;  %v2654_v42 = vld [vmem:[#allocation6 + $0x228] sm:$0xf] }
  0xb8   :  { %1066 = vmatpush.bf16.msra.mxu0 %v2039_v47  ;;  %1079 = vmatpush.bf16.msra.mxu1 %v2135_v48  ;;  %v2950_v47 = vld [vmem:[#allocation6 + $0x2f0] sm:$0xf0]  ;;  %v2451_v48 = vor.u32 %v2875_v34, %v2450_v33  ;;  %v2291_v52 = vor.u32 %v2834_v41, %v2290_v18  ;;  %v2655_v58 = vor.u32 %v2926_v45, %v2654_v42  ;;  %v2606_v41 = vld [vmem:[#allocation6 + $0x1c8] sm:$0xf] }
  0xb9   :  { %v2751_v59 = vor.u32 %v2950_v47, %v2750_v46  ;;  %v255_v33 = vadd.f32 %v3228_v44, %v120_v15  ;;  %v2511_v34 = vor.u32 %v2890_v24, %v2510_v23  ;;  %v2914_v42 = vld [vmem:[#allocation6 + $0x1d0] sm:$0xf0]  ;;  %v122_v44 = vperm.slane %v3204_v30, 7  ;;  %v2702_v45 = vld [vmem:[#allocation6 + $0x288] sm:$0xf] }
  0xba   :  { %v2938_v46 = vld [vmem:[#allocation6 + $0x290] sm:$0xf0]  ;;  %v2678_v15 = vld [vmem:[#allocation6 + $0x258] sm:$0xf] }
  0xbb   :  { %1091 = vmatpush.bf16.msra.mxu2 %v2243_v53  ;;  %1104 = vmatpush.bf16.msra.mxu3 %v2339_v54  ;;  %v2872_v53 = vld [vmem:[#allocation6 + $0x80] sm:$0xf0]  ;;  %v2534_v54 = vld [vmem:[#allocation6 + $0x138] sm:$0xf]  ;;  %v269_v38 = vpop.f32.mrf.mxu2 }
  0xbc   :  { %1067 = vmatpush.bf16.msra.mxu0 %v2027_v61  ;;  %1080 = vmatpush.bf16.msra.mxu1 %v2123_v62  ;;  %v2923_v61 = vld [vmem:[#allocation6 + $0x218] sm:$0xf0]  ;;  %v2738_v62 = vld [vmem:[#allocation6 + $0x2d0] sm:$0xf]  ;;  %v2439_v0 = vor.u32 %v2872_v53, %v2438_v50  ;;  %v2535_v1 = vor.u32 %v2896_v55, %v2534_v54  ;;  %v2860_v53 = vld [vmem:[#allocation6 + $0x20] sm:$0xf0] }
  0xbd   :  { %v2739_v7 = vor.u32 %v2947_v63, %v2738_v62  ;;  %v2486_v54 = vld [vmem:[#allocation6 + $0xd8] sm:$0xf]  ;;  %v2884_v55 = vld [vmem:[#allocation6 + $0xe0] sm:$0xf0]  ;;  %v2690_v62 = vld [vmem:[#allocation6 + $0x270] sm:$0xf] }
  0xbe   :  { %1044 = vmatmul.bf16.vlgmr.msrb.gmra.mxu2 %v3216_v20  ;;  %1057 = vmatmul.bf16.vlgmr.msrb.gmra.mxu3 %v3218_v21  ;;  %v2935_v63 = vld [vmem:[#allocation6 + $0x278] sm:$0xf0]  ;;  %v2925_v38 = vld [vmem:[#allocation6 + $0x22c] sm:$0xf] }
  0xbf   :  { %1092 = vmatpush.bf16.msra.mxu2 %v2231_v3  ;;  %1105 = vmatpush.bf16.msra.mxu3 %v2327_v4  ;;  %v2869_v3 = vld [vmem:[#allocation6 + $0x68] sm:$0xf0]  ;;  %v2522_v4 = vld [vmem:[#allocation6 + $0x120] sm:$0xf] }
  0xc0   :  { %1068 = vmatpush.bf16.msra.mxu0 %v2015_v9  ;;  %1081 = vmatpush.bf16.msra.mxu1 %v2111_v10  ;;  %v2920_v9 = vld [vmem:[#allocation6 + $0x200] sm:$0xf0]  ;;  %v243_v10 = vpop.f32.mrf.mxu0  ;;  %v2427_v16 = vor.u32 %v2869_v3, %v2426_v2  ;;  %v2487_v3 = vor.u32 %v2884_v55, %v2486_v54  ;;  %v2644_v54 = vld [vmem:[#allocation6 + $0x21c] sm:$0xf0]  ;;  %v2946_v55 = vld [vmem:[#allocation6 + $0x2d4] sm:$0xf] }
  0xc1   :  { %v2631_v25 = vor.u32 %v2920_v9, %v2630_v8  ;;  %v2464_v8 = vld [vmem:[#allocation6 + $0xb4] sm:$0xf0]  ;;  %v2901_v9 = vld [vmem:[#allocation6 + $0x16c] sm:$0xf] }
  0xc3   :  { %1093 = vmatpush.bf16.msra.mxu2 %v2219_v17  ;;  %1106 = vmatpush.bf16.msra.mxu3 %v2315_v19  ;;  %v2523_v17 = vor.u32 %v2893_v5, %v2522_v4  ;;  %v2414_v19 = vld [vmem:[#allocation6 + $0x48] sm:$0xf]  ;;  %v2857_v4 = vld [vmem:[#allocation6 + $0x8] sm:$0xf0]  ;;  %v2474_v5 = vld [vmem:[#allocation6 + $0xc0] sm:$0xf] }
  0xc4   :  { %1069 = vmatpush.bf16.msra.mxu0 %v2003_v28  ;;  %1082 = vmatpush.bf16.msra.mxu1 %v2099_v29  ;;  %v2917_v28 = vld [vmem:[#allocation6 + $0x1e8] sm:$0xf0]  ;;  %v2714_v29 = vld [vmem:[#allocation6 + $0x2a0] sm:$0xf] }
  0xc5   :  { %v2619_v40 = vor.u32 %v2917_v28, %v2618_v27  ;;  %v2452_v27 = vld [vmem:[#allocation6 + $0x9c] sm:$0xf0]  ;;  %v2898_v28 = vld [vmem:[#allocation6 + $0x154] sm:$0xf] }
  0xc7   :  { %1094 = vmatpush.bf16.msra.mxu2 %v2207_v36  ;;  %1107 = vmatpush.bf16.msra.mxu3 %v2303_v37  ;;  %v2498_v36 = vld [vmem:[#allocation6 + $0xf0] sm:$0xf]  ;;  %v2887_v37 = vld [vmem:[#allocation6 + $0xf8] sm:$0xf0] }
  0xc8   :  { %1779 = vmatpush.bf16.msrb.mxu0 %v2463_v31  ;;  %1792 = vmatpush.bf16.msrb.mxu1 %v2559_v32  ;;  %v2941_v31 = vld [vmem:[#allocation6 + $0x2a8] sm:$0xf0]  ;;  %v242_v32 = vadd.f32 %v3226_v43, %v119_v14  ;;  %v121_v43 = vperm.slane %v3204_v30, 6  ;;  %v2499_v50 = vor.u32 %v2887_v37, %v2498_v36  ;;  %v2908_v14 = vld [vmem:[#allocation6 + $0x1a0] sm:$0xf0] }
  0xc9   :  { %1070 = vmatmul.bf16.vlgmr.msra.gmra.mxu0 %v3210_v56  ;;  %1083 = vmatmul.bf16.vlgmr.msra.gmra.mxu1 %v3212_v57  ;;  %v3234_v56 = vpop.f32.mrf.mxu3  ;;  %v2643_v57 = vor.u32 %v2923_v61, %v2642_v60  ;;  %v2715_v18 = vor.u32 %v2941_v31, %v2714_v29  ;;  %v2911_v60 = vld [vmem:[#allocation6 + $0x1b8] sm:$0xf0]  ;;  %v2666_v36 = vld [vmem:[#allocation6 + $0x240] sm:$0xf]  ;;  %v2929_v37 = vld [vmem:[#allocation6 + $0x248] sm:$0xf0] }
  0xca   :  { %v288_v47 = vmax.f32 %v242_v32, 0.0  ;;  %v268_v30 = vadd.f32 %v3232_v6, %v121_v43  ;;  %v281_v61 = vadd.f32 %v3234_v56, %v122_v44  ;;  %v2691_v6 = vor.u32 %v2935_v63, %v2690_v62  ;;  %v2582_v56 = vld [vmem:[#allocation6 + $0x198] sm:$0xf]  ;;  %v2548_v32 = vld [vmem:[#allocation6 + $0x15c] sm:$0xf0] }
  0xcb   :  { %1095 = vmatpush.bf16.msra.mxu2 %v2195_v51  ;;  %1108 = vmatpush.bf16.msra.mxu3 %v2291_v52  ;;  %v2390_v51 = vld [vmem:[#allocation6 + $0x18] sm:$0xf]  ;;  %v2607_v52 = vor.u32 %v2914_v42, %v2606_v41  ;;  %v2583_v29 = vor.u32 %v2908_v14, %v2582_v56  ;;  %v2551_v42 = vor.u32 %v2898_v28, %v2548_v32  ;;  %v2871_v43 = vld [vmem:[#allocation6 + $0x7c] sm:$0xf]  ;;  %v2428_v63 = vld [vmem:[#allocation6 + $0x6c] sm:$0xf0] }
  0xcc   :  { %1780 = vmatpush.bf16.msrb.mxu0 %v2451_v48  ;;  %1793 = vmatpush.bf16.msrb.mxu1 %v2547_v49  ;;  %v289_v48 = vmax.f32 %v255_v33, 0.0  ;;  %v2391_v2 = vor.u32 %v2860_v53, %v2390_v51  ;;  %v290_v12 = vmax.f32 %v268_v30, 0.0  ;;  %v291_v13 = vmax.f32 %v281_v61, 0.0  ;;  %v2570_v33 = vld [vmem:[#allocation6 + $0x180] sm:$0xf] }
  0xcd   :  { %v2922_v53 = vld [vmem:[#allocation6 + $0x214] sm:$0xf]  ;;  %v2868_v30 = vld [vmem:[#allocation6 + $0x64] sm:$0xf]  ;;  %v2512_v56 = vld [vmem:[#allocation6 + $0x114] sm:$0xf0] }
  0xce   :  { %1096 = vmatmul.bf16.vlgmr.msra.gmra.mxu2 %v3216_v20  ;;  %1109 = vmatmul.bf16.vlgmr.msra.gmra.mxu3 %v3218_v21  ;;  %v2415_v20 = vor.u32 %v2866_v22, %v2414_v19  ;;  %v2402_v21 = vld [vmem:[#allocation6 + $0x30] sm:$0xf]  ;;  %v2916_v14 = vld [vmem:[#allocation6 + $0x1e4] sm:$0xf]  ;;  %v2937_v32 = vld [vmem:[#allocation6 + $0x28c] sm:$0xf] }
  0xcf   :  { %1805 = vmatpush.bf16.msrb.mxu2 %v2655_v58  ;;  %1818 = vmatpush.bf16.msrb.mxu3 %v2751_v59  ;;  %v2403_v49 = vor.u32 %v2863_v35, %v2402_v21  ;;  %v2703_v58 = vor.u32 %v2938_v46, %v2702_v45  ;;  %v2594_v59 = vld [vmem:[#allocation6 + $0x1b0] sm:$0xf]  ;;  %v2667_v45 = vor.u32 %v2929_v37, %v2666_v36  ;;  %v2440_v46 = vld [vmem:[#allocation6 + $0x84] sm:$0xf0]  ;;  %v2859_v36 = vld [vmem:[#allocation6 + $0x1c] sm:$0xf] }
  0xd0   :  { %1781 = vmatpush.bf16.msrb.mxu0 %v2439_v0  ;;  %1794 = vmatpush.bf16.msrb.mxu1 %v2535_v1  ;;  %v2378_v0 = vld [vmem:[#allocation6] sm:$0xf]  ;;  %v294_v1 = vpack.c.bf16 %v289_v48, %v288_v47  ;;  %v2595_v10 = vor.u32 %v2911_v60, %v2594_v59  ;;  %v2895_v47 = vld [vmem:[#allocation6 + $0x13c] sm:$0xf]  ;;  %v2536_v48 = vld [vmem:[#allocation6 + $0x144] sm:$0xf0]  ;;  %v2443_v59 = vor.u32 %v2871_v43, %v2440_v46 }
  0xd1   :  { %v282_v39 = vpop.f32.mrf.mxu3  ;;  %v2379_v22 = vor.u32 %v2857_v4, %v2378_v0  ;;  %v2539_v60 = vor.u32 %v2895_v47, %v2536_v48  ;;  %v2892_v0 = vld [vmem:[#allocation6 + $0x124] sm:$0xf]  ;;  %v2919_v4 = vld [vmem:[#allocation6 + $0x1fc] sm:$0xf]  ;;  %v2392_v37 = vld [vmem:[#allocation6 + $0x24] sm:$0xf0] }
  0xd2   :  { %v1256_v19 = vunpack.c.h.b16 %v294_v1  ;;  %v2656_v39 = vld [vmem:[#allocation6 + $0x234] sm:$0xf0]  ;;  %v2934_v43 = vld [vmem:[#allocation6 + $0x274] sm:$0xf]  ;;  %v2856_v47 = vld [vmem:[#allocation6 + $0x4] sm:$0xf] }
  0xd3   :  { %1806 = vmatpush.bf16.msrb.mxu2 %v2643_v57  ;;  %1819 = vmatpush.bf16.msrb.mxu3 %v2739_v7  ;;  %v2881_v57 = vld [vmem:[#allocation6 + $0xc8] sm:$0xf0]  ;;  %v2659_v51 = vor.u32 %v2925_v38, %v2656_v39  ;;  %v2883_v38 = vld [vmem:[#allocation6 + $0xdc] sm:$0xf]  ;;  %v2488_v39 = vld [vmem:[#allocation6 + $0xe4] sm:$0xf0] }
  0xd4   :  { %1782 = vmatpush.bf16.msrb.mxu0 %v2427_v16  ;;  %1795 = vmatpush.bf16.msrb.mxu1 %v2523_v17  ;;  %v2877_v7 = vld [vmem:[#allocation6 + $0xac] sm:$0xf]  ;;  %v2932_v16 = vld [vmem:[#allocation6 + $0x260] sm:$0xf0]  ;;  %v1255_v17 = vunpack.c.l.b16 %v294_v1  ;;  %v2475_v23 = vor.u32 %v2881_v57, %v2474_v5  ;;  %v3248_v35 = vpack.c.b16 %v1256_v19, %v1256_v19  ;;  %v2524_v1 = vld [vmem:[#allocation6 + $0x12c] sm:$0xf0]  ;;  %v2491_v46 = vor.u32 %v2883_v38, %v2488_v39 }
  0xd5   :  { %v2467_v24 = vor.u32 %v2877_v7, %v2464_v8  ;;  %v2679_v31 = vor.u32 %v2932_v16, %v2678_v15  ;;  %v2632_v5 = vld [vmem:[#allocation6 + $0x204] sm:$0xf0]  ;;  %v2943_v57 = vld [vmem:[#allocation6 + $0x2bc] sm:$0xf]  ;;  %v2431_v8 = vor.u32 %v2868_v30, %v2428_v63  ;;  %v2620_v15 = vld [vmem:[#allocation6 + $0x1ec] sm:$0xf0] }
  0xd6   :  { %v3246_v21 = vpack.c.b16 %v1255_v17, %v1255_v17  ;;  %v2728_v7 = vld [vmem:[#allocation6 + $0x2c4] sm:$0xf0]  ;;  %v2940_v16 = vld [vmem:[#allocation6 + $0x2a4] sm:$0xf]  ;;  %v2716_v17 = vld [vmem:[#allocation6 + $0x2ac] sm:$0xf0] }
  0xd7   :  { %1807 = vmatpush.bf16.msrb.mxu2 %v2631_v25  ;;  %1820 = vmatpush.bf16.msrb.mxu3 %v2727_v26  ;;  %v2563_v25 = vor.u32 %v2901_v9, %v2560_v11  ;;  %v2874_v26 = vld [vmem:[#allocation6 + $0x94] sm:$0xf]  ;;  %v2527_v9 = vor.u32 %v2892_v0, %v2524_v1  ;;  %v2889_v11 = vld [vmem:[#allocation6 + $0x10c] sm:$0xf]  ;;  %v2719_v28 = vor.u32 %v2940_v16, %v2716_v17  ;;  %v2380_v48 = vld [vmem:[#allocation6 + $0xc] sm:$0xf0] }
  0xd8   :  { %1783 = vmatpush.bf16.msrb.mxu0 %v2415_v20  ;;  %1796 = vmatpush.bf16.msrb.mxu1 %v2511_v34  ;;  %v2905_v20 = vld [vmem:[#allocation6 + $0x188] sm:$0xf0]  ;;  %v295_v34 = vpack.c.bf16 %v291_v13, %v290_v12  ;;  %v2455_v41 = vor.u32 %v2874_v26, %v2452_v27  ;;  %v2635_v12 = vor.u32 %v2919_v4, %v2632_v5  ;;  %v2500_v26 = vld [vmem:[#allocation6 + $0xfc] sm:$0xf0]  ;;  %v2931_v30 = vld [vmem:[#allocation6 + $0x25c] sm:$0xf] }
  0xd9   :  { %v2571_v44 = vor.u32 %v2905_v20, %v2570_v33  ;;  %v2731_v13 = vor.u32 %v2943_v57, %v2728_v7  ;;  %v2623_v27 = vor.u32 %v2916_v14, %v2620_v15  ;;  %v2704_v33 = vld [vmem:[#allocation6 + $0x294] sm:$0xf0]  ;;  %v2680_v63 = vld [vmem:[#allocation6 + $0x264] sm:$0xf0]  ;;  %v2383_v0 = vor.u32 %v2856_v47, %v2380_v48  ;;  %v2876_v5 = vld [vmem:[#allocation6 + $0xa0] sm:$0xf0] }
  0xda   :  { %v2458_v4 = vld [vmem:[#allocation6 + $0x98] sm:$0xf]  ;;  %v2758_v14 = vld [vmem:[#allocation6 + $0x2f0] sm:$0xf]  ;;  %v2951_v15 = vld [vmem:[#allocation6 + $0x2f8] sm:$0xf0] }
  0xdb   :  { %1808 = vmatpush.bf16.msrb.mxu2 %v2619_v40  ;;  %1821 = vmatpush.bf16.msrb.mxu3 %v2715_v18  ;;  %v2949_v40 = vld [vmem:[#allocation6 + $0x2ec] sm:$0xf]  ;;  %v2752_v18 = vld [vmem:[#allocation6 + $0x2f4] sm:$0xf0]  ;;  %v2459_v16 = vor.u32 %v2876_v5, %v2458_v4  ;;  %v2422_v47 = vld [vmem:[#allocation6 + $0x50] sm:$0xf] }
  0xdc   :  { %1784 = vmatpush.bf16.msrb.mxu0 %v2403_v49  ;;  %1797 = vmatpush.bf16.msrb.mxu1 %v2499_v50  ;;  %v1257_v49 = vunpack.c.l.b16 %v295_v34  ;;  %v1258_v50 = vunpack.c.h.b16 %v295_v34  ;;  %v2554_v57 = vld [vmem:[#allocation6 + $0x158] sm:$0xf]  ;;  %v2867_v48 = vld [vmem:[#allocation6 + $0x58] sm:$0xf0]  ;;  %v2614_v4 = vld [vmem:[#allocation6 + $0x1d0] sm:$0xf] }
  0xdd   :  { %v2915_v5 = vld [vmem:[#allocation6 + $0x1d8] sm:$0xf0] }
  0xde   :  { %v3252_v61 = vpack.c.b16 %v1257_v49, %v1257_v49  ;;  %v3254_v62 = vpack.c.b16 %v1258_v50, %v1258_v50  ;;  %v2880_v49 = vld [vmem:[#allocation6 + $0xc4] sm:$0xf]  ;;  %v2476_v50 = vld [vmem:[#allocation6 + $0xcc] sm:$0xf0] }
  0xdf   :  { %1809 = vmatpush.bf16.msrb.mxu2 %v2607_v52  ;;  %1822 = vmatpush.bf16.msrb.mxu3 %v2703_v58  ;;  %v2755_v52 = vor.u32 %v2949_v40, %v2752_v18  ;;  %v2740_v58 = vld [vmem:[#allocation6 + $0x2dc] sm:$0xf0]  ;;  %v2707_v18 = vor.u32 %v2937_v32, %v2704_v33  ;;  %v2479_v1 = vor.u32 %v2880_v49, %v2476_v50  ;;  %v2746_v32 = vld [vmem:[#allocation6 + $0x2d8] sm:$0xf]  ;;  %v2948_v33 = vld [vmem:[#allocation6 + $0x2e0] sm:$0xf0] }
  0xe0   :  { %1785 = vmatpush.bf16.msrb.mxu0 %v2391_v2  ;;  %1798 = vmatpush.bf16.msrb.mxu1 %v2487_v3  ;;  %v2647_v2 = vor.u32 %v2922_v53, %v2644_v54  ;;  %v2743_v3 = vor.u32 %v2946_v55, %v2740_v58  ;;  %v2566_v55 = vld [vmem:[#allocation6 + $0x170] sm:$0xf]  ;;  %v2903_v58 = vld [vmem:[#allocation6 + $0x178] sm:$0xf0]  ;;  %v2747_v39 = vor.u32 %v2948_v33, %v2746_v32  ;;  %v2686_v32 = vld [vmem:[#allocation6 + $0x260] sm:$0xf] }
  0xe1   :  { %v2933_v33 = vld [vmem:[#allocation6 + $0x268] sm:$0xf0] }
  0xe3   :  { %1810 = vmatpush.bf16.msrb.mxu2 %v2595_v10  ;;  %1823 = vmatpush.bf16.msrb.mxu3 %v2691_v6  ;;  %v2865_v10 = vld [vmem:[#allocation6 + $0x4c] sm:$0xf]  ;;  %v2416_v6 = vld [vmem:[#allocation6 + $0x54] sm:$0xf0] }
  0xe4   :  { %1786 = vmatpush.bf16.msrb.mxu0 %v2379_v22  ;;  %1799 = vmatpush.bf16.msrb.mxu1 %v2475_v23  ;;  %v2419_v19 = vor.u32 %v2865_v10, %v2416_v6  ;;  %v2515_v22 = vor.u32 %v2889_v11, %v2512_v56  ;;  %v2862_v23 = vld [vmem:[#allocation6 + $0x34] sm:$0xf]  ;;  %v2904_v10 = vld [vmem:[#allocation6 + $0x184] sm:$0xf]  ;;  %v2572_v6 = vld [vmem:[#allocation6 + $0x18c] sm:$0xf0] }
  0xe5   :  { %v2928_v11 = vld [vmem:[#allocation6 + $0x244] sm:$0xf]  ;;  %v2668_v56 = vld [vmem:[#allocation6 + $0x24c] sm:$0xf0] }
  0xe7   :  { %1811 = vmatpush.bf16.msrb.mxu2 %v2583_v29  ;;  %1824 = vmatpush.bf16.msrb.mxu3 %v2679_v31  ;;  %v2913_v29 = vld [vmem:[#allocation6 + $0x1cc] sm:$0xf]  ;;  %v2608_v31 = vld [vmem:[#allocation6 + $0x1d4] sm:$0xf0] }
  0xe8   :  { %1831 = vmatpush.bf16.msra.mxu0 %v2467_v24  ;;  %1844 = vmatpush.bf16.msra.mxu1 %v2563_v25  ;;  %v2404_v24 = vld [vmem:[#allocation6 + $0x3c] sm:$0xf0]  ;;  %v2886_v25 = vld [vmem:[#allocation6 + $0xf4] sm:$0xf]  ;;  %v2611_v40 = vor.u32 %v2913_v29, %v2608_v31  ;;  %v2650_v29 = vld [vmem:[#allocation6 + $0x218] sm:$0xf] }
  0xe9   :  { %1787 = vmatmul.bf16.vlgmr.msrb.gmra.mxu0 %v3246_v21  ;;  %1800 = vmatmul.bf16.vlgmr.msrb.gmra.mxu1 %v3248_v35  ;;  %v2407_v20 = vor.u32 %v2862_v23, %v2404_v24  ;;  %v2503_v34 = vor.u32 %v2886_v25, %v2500_v26  ;;  %v2446_v23 = vld [vmem:[#allocation6 + $0x80] sm:$0xf]  ;;  %v2873_v24 = vld [vmem:[#allocation6 + $0x88] sm:$0xf0]  ;;  %v2759_v26 = vor.u32 %v2951_v15, %v2758_v14  ;;  %v2924_v31 = vld [vmem:[#allocation6 + $0x220] sm:$0xf0] }
  0xea   :  { %v2651_v38 = vor.u32 %v2924_v31, %v2650_v29  ;;  %v2602_v14 = vld [vmem:[#allocation6 + $0x1b8] sm:$0xf]  ;;  %v2912_v15 = vld [vmem:[#allocation6 + $0x1c0] sm:$0xf0]  ;;  %v2590_v29 = vld [vmem:[#allocation6 + $0x1a0] sm:$0xf] }
  0xeb   :  { %1812 = vmatpush.bf16.msrb.mxu2 %v2571_v44  ;;  %1825 = vmatpush.bf16.msrb.mxu3 %v2667_v45  ;;  %v2692_v44 = vld [vmem:[#allocation6 + $0x27c] sm:$0xf0]  ;;  %v2395_v45 = vor.u32 %v2859_v36, %v2392_v37  ;;  %v2434_v36 = vld [vmem:[#allocation6 + $0x68] sm:$0xf]  ;;  %v2870_v37 = vld [vmem:[#allocation6 + $0x70] sm:$0xf0] }
  0xec   :  { %1832 = vmatpush.bf16.msra.mxu0 %v2455_v41  ;;  %1845 = vmatpush.bf16.msra.mxu1 %v2551_v42  ;;  %v2910_v41 = vld [vmem:[#allocation6 + $0x1b4] sm:$0xf]  ;;  %v2596_v42 = vld [vmem:[#allocation6 + $0x1bc] sm:$0xf0]  ;;  %v2695_v54 = vor.u32 %v2934_v43, %v2692_v44  ;;  %v2945_v44 = vld [vmem:[#allocation6 + $0x2c8] sm:$0xf0] }
  0xed   :  { %v2599_v53 = vor.u32 %v2910_v41, %v2596_v42  ;;  %v2638_v41 = vld [vmem:[#allocation6 + $0x200] sm:$0xf]  ;;  %v2921_v42 = vld [vmem:[#allocation6 + $0x208] sm:$0xf0] }
  0xee   :  { %1813 = vmatmul.bf16.vlgmr.msrb.gmra.mxu2 %v3252_v61  ;;  %1826 = vmatmul.bf16.vlgmr.msrb.gmra.mxu3 %v3254_v62  ;;  %v2734_v43 = vld [vmem:[#allocation6 + $0x2c0] sm:$0xf]  ;;  %v2639_v49 = vor.u32 %v2921_v42, %v2638_v41  ;;  %v2909_v31 = vld [vmem:[#allocation6 + $0x1a8] sm:$0xf0] }
  0xef   :  { %1857 = vmatpush.bf16.msra.mxu2 %v2659_v51  ;;  %1870 = vmatpush.bf16.msra.mxu3 %v2755_v52  ;;  %v2470_v51 = vld [vmem:[#allocation6 + $0xb0] sm:$0xf]  ;;  %v2879_v52 = vld [vmem:[#allocation6 + $0xb8] sm:$0xf0]  ;;  %v2735_v50 = vor.u32 %v2945_v44, %v2734_v43 }
  0xf0   :  { %1833 = vmatpush.bf16.msra.mxu0 %v2443_v59  ;;  %1846 = vmatpush.bf16.msra.mxu1 %v2539_v60  ;;  %v2907_v59 = vld [vmem:[#allocation6 + $0x19c] sm:$0xf]  ;;  %v2584_v60 = vld [vmem:[#allocation6 + $0x1a4] sm:$0xf0] }
  0xf1   :  { %v2587_v7 = vor.u32 %v2907_v59, %v2584_v60  ;;  %v2423_v59 = vor.u32 %v2867_v48, %v2422_v47 }
  0xf3   :  { %1858 = vmatpush.bf16.msra.mxu2 %v2647_v2  ;;  %1871 = vmatpush.bf16.msra.mxu3 %v2743_v3  ;;  %v2471_v2 = vor.u32 %v2879_v52, %v2470_v51  ;;  %v2567_v3 = vor.u32 %v2903_v58, %v2566_v55  ;;  %v2518_v51 = vld [vmem:[#allocation6 + $0x110] sm:$0xf]  ;;  %v2891_v52 = vld [vmem:[#allocation6 + $0x118] sm:$0xf0]  ;;  %v2722_v55 = vld [vmem:[#allocation6 + $0x2a8] sm:$0xf] }
  0xf4   :  { %1834 = vmatpush.bf16.msra.mxu0 %v2431_v8  ;;  %1847 = vmatpush.bf16.msra.mxu1 %v2527_v9  ;;  %v2683_v8 = vor.u32 %v2931_v30, %v2680_v63  ;;  %v2900_v9 = vld [vmem:[#allocation6 + $0x160] sm:$0xf0]  ;;  %v2942_v58 = vld [vmem:[#allocation6 + $0x2b0] sm:$0xf0]  ;;  %v2519_v60 = vor.u32 %v2891_v52, %v2518_v51  ;;  %v2410_v30 = vld [vmem:[#allocation6 + $0x38] sm:$0xf] }
  0xf5   :  { %v2555_v17 = vor.u32 %v2900_v9, %v2554_v57  ;;  %v2864_v63 = vld [vmem:[#allocation6 + $0x40] sm:$0xf0]  ;;  %v2710_v57 = vld [vmem:[#allocation6 + $0x290] sm:$0xf] }
  0xf7   :  { %1859 = vmatpush.bf16.msra.mxu2 %v2635_v12  ;;  %1872 = vmatpush.bf16.msra.mxu3 %v2731_v13  ;;  %v2662_v12 = vld [vmem:[#allocation6 + $0x230] sm:$0xf]  ;;  %v2927_v13 = vld [vmem:[#allocation6 + $0x238] sm:$0xf0] }
  0xf8   :  { %1835 = vmatpush.bf16.msra.mxu0 %v2419_v19  ;;  %1848 = vmatpush.bf16.msra.mxu1 %v2515_v22  ;;  %v2575_v19 = vor.u32 %v2904_v10, %v2572_v6  ;;  %v2671_v22 = vor.u32 %v2928_v11, %v2668_v56  ;;  %v2663_v25 = vor.u32 %v2927_v13, %v2662_v12  ;;  %v2398_v10 = vld [vmem:[#allocation6 + $0x20] sm:$0xf]  ;;  %v2861_v6 = vld [vmem:[#allocation6 + $0x28] sm:$0xf0] }
  0xf9   :  { %v2615_v11 = vor.u32 %v2915_v5, %v2614_v4  ;;  %v2494_v12 = vld [vmem:[#allocation6 + $0xe0] sm:$0xf]  ;;  %v2885_v13 = vld [vmem:[#allocation6 + $0xe8] sm:$0xf0] }
  0xfb   :  { %1860 = vmatpush.bf16.msra.mxu2 %v2623_v27  ;;  %1873 = vmatpush.bf16.msra.mxu3 %v2719_v28  ;;  %v2542_v27 = vld [vmem:[#allocation6 + $0x140] sm:$0xf]  ;;  %v2897_v28 = vld [vmem:[#allocation6 + $0x148] sm:$0xf0] }
  0xfc   :  { %1836 = vmatpush.bf16.msra.mxu0 %v2407_v20  ;;  %1849 = vmatpush.bf16.msra.mxu1 %v2503_v34  ;;  %v2447_v20 = vor.u32 %v2873_v24, %v2446_v23  ;;  %v2543_v34 = vor.u32 %v2897_v28, %v2542_v27  ;;  %v2386_v23 = vld [vmem:[#allocation6 + $0x8] sm:$0xf]  ;;  %v2858_v24 = vld [vmem:[#allocation6 + $0x10] sm:$0xf0] }
  0xfd   :  { %v2482_v27 = vld [vmem:[#allocation6 + $0xc8] sm:$0xf]  ;;  %v2882_v28 = vld [vmem:[#allocation6 + $0xd0] sm:$0xf0] }
  0xff   :  { %1861 = vmatpush.bf16.msra.mxu2 %v2611_v40  ;;  %1874 = vmatpush.bf16.msra.mxu3 %v2707_v18  ;;  %v2530_v40 = vld [vmem:[#allocation6 + $0x128] sm:$0xf]  ;;  %v2894_v18 = vld [vmem:[#allocation6 + $0x130] sm:$0xf0] }
 0x100   :  { %1837 = vmatpush.bf16.msra.mxu0 %v2395_v45  ;;  %1850 = vmatpush.bf16.msra.mxu1 %v2491_v46  ;;  %v2435_v45 = vor.u32 %v2870_v37, %v2434_v36  ;;  %v2531_v46 = vor.u32 %v2894_v18, %v2530_v40  ;;  %v2591_v36 = vor.u32 %v2909_v31, %v2590_v29  ;;  %v2674_v40 = vld [vmem:[#allocation6 + $0x248] sm:$0xf]  ;;  %v2930_v18 = vld [vmem:[#allocation6 + $0x250] sm:$0xf0] }
 0x101   :  { %v2687_v37 = vor.u32 %v2933_v33, %v2686_v32  ;;  %v2675_v42 = vor.u32 %v2930_v18, %v2674_v40  ;;  %v1245_v32 = vld [vmem:[#allocation7] sm:$0x7] }
 0x102   :  { %v1247_v33 = vperm.slane %v1245_v32, 0 }
 0x103   :  { %1862 = vmatpush.bf16.msra.mxu2 %v2599_v53  ;;  %1875 = vmatpush.bf16.msra.mxu3 %v2695_v54  ;;  %v2626_v53 = vld [vmem:[#allocation6 + $0x1e8] sm:$0xf]  ;;  %v2918_v54 = vld [vmem:[#allocation6 + $0x1f0] sm:$0xf0] }
 0x104   :  { %1838 = vmatpush.bf16.msra.mxu0 %v2383_v0  ;;  %1851 = vmatpush.bf16.msra.mxu1 %v2479_v1  ;;  %v2627_v0 = vor.u32 %v2918_v54, %v2626_v53  ;;  %v2723_v1 = vor.u32 %v2942_v58, %v2722_v55 }
 0x107   :  { %1863 = vmatpush.bf16.msra.mxu2 %v2587_v7  ;;  %1876 = vmatpush.bf16.msra.mxu3 %v2683_v8  ;;  %v2939_v7 = vld [vmem:[#allocation6 + $0x298] sm:$0xf0]  ;;  %v2411_v8 = vor.u32 %v2864_v63, %v2410_v30 }
 0x108   :  { %1883 = vmatpush.bf16.msrb.mxu0 %v2471_v2  ;;  %1896 = vmatpush.bf16.msrb.mxu1 %v2567_v3  ;;  %v2506_v2 = vld [vmem:[#allocation6 + $0xf8] sm:$0xf]  ;;  %v2888_v3 = vld [vmem:[#allocation6 + $0x100] sm:$0xf0]  ;;  %v2711_v56 = vor.u32 %v2939_v7, %v2710_v57 }
 0x109   :  { %1839 = vmatmul.bf16.vlgmr.msra.gmra.mxu0 %v3246_v21  ;;  %1852 = vmatmul.bf16.vlgmr.msra.gmra.mxu1 %v3248_v35  ;;  %v2507_v9 = vor.u32 %v2888_v3, %v2506_v2 }
 0x10b   :  { %1864 = vmatpush.bf16.msra.mxu2 %v2575_v19  ;;  %1877 = vmatpush.bf16.msra.mxu3 %v2671_v22  ;;  %v2399_v19 = vor.u32 %v2861_v6, %v2398_v10  ;;  %v2495_v22 = vor.u32 %v2885_v13, %v2494_v12  ;;  %v1938_v6 = vld [vmem:[%s3285_s7] sm:$0x7] }
 0x10c   :  { %1884 = vmatpush.bf16.msrb.mxu0 %v2459_v16  ;;  %1897 = vmatpush.bf16.msrb.mxu1 %v2555_v17  ;;  %v2698_v16 = vld [vmem:[#allocation6 + $0x278] sm:$0xf]  ;;  %v2936_v17 = vld [vmem:[#allocation6 + $0x280] sm:$0xf0] }
 0x10e   :  { %1865 = vmatmul.bf16.vlgmr.msra.gmra.mxu2 %v3252_v61  ;;  %1878 = vmatmul.bf16.vlgmr.msra.gmra.mxu3 %v3254_v62 }
 0x10f   :  { %1909 = vmatpush.bf16.msrb.mxu2 %v2663_v25  ;;  %1922 = vmatpush.bf16.msrb.mxu3 %v2759_v26  ;;  %v2603_v25 = vor.u32 %v2912_v15, %v2602_v14  ;;  %v2699_v26 = vor.u32 %v2936_v17, %v2698_v16  ;;  %v1940_v16 = vperm.slane %v1938_v6, 0 }
 0x110   :  { %1885 = vmatpush.bf16.msrb.mxu0 %v2447_v20  ;;  %1898 = vmatpush.bf16.msrb.mxu1 %v2543_v34  ;;  %v2387_v20 = vor.u32 %v2858_v24, %v2386_v23  ;;  %v2483_v34 = vor.u32 %v2882_v28, %v2482_v27  ;;  %v1942_v23 = vperm.slane %v1938_v6, 2 }
 0x113   :  { %1910 = vmatpush.bf16.msrb.mxu2 %v2651_v38  ;;  %1923 = vmatpush.bf16.msrb.mxu3 %v2747_v39  ;;  %v2578_v38 = vld [vmem:[#allocation6 + $0x188] sm:$0xf]  ;;  %v2906_v39 = vld [vmem:[#allocation6 + $0x190] sm:$0xf0] }
 0x114   :  { %1886 = vmatpush.bf16.msrb.mxu0 %v2435_v45  ;;  %1899 = vmatpush.bf16.msrb.mxu1 %v2531_v46  ;;  %v2579_v41 = vor.u32 %v2906_v39, %v2578_v38 }
 0x117   :  { %1911 = vmatpush.bf16.msrb.mxu2 %v2639_v49  ;;  %1924 = vmatpush.bf16.msrb.mxu3 %v2735_v50 }
 0x118   :  { %1887 = vmatpush.bf16.msrb.mxu0 %v2423_v59  ;;  %1900 = vmatpush.bf16.msrb.mxu1 %v2519_v60 }
 0x11b   :  { %1912 = vmatpush.bf16.msrb.mxu2 %v2627_v0  ;;  %1925 = vmatpush.bf16.msrb.mxu3 %v2723_v1 }
 0x11c   :  { %1888 = vmatpush.bf16.msrb.mxu0 %v2411_v8  ;;  %1901 = vmatpush.bf16.msrb.mxu1 %v2507_v9 }
 0x11f   :  { %1913 = vmatpush.bf16.msrb.mxu2 %v2615_v11  ;;  %1926 = vmatpush.bf16.msrb.mxu3 %v2711_v56  ;;  %v1941_v56 = vperm.slane %v1938_v6, 1 }
 0x120   :  { %1889 = vmatpush.bf16.msrb.mxu0 %v2399_v19  ;;  %1902 = vmatpush.bf16.msrb.mxu1 %v2495_v22 }
 0x123   :  { %1914 = vmatpush.bf16.msrb.mxu2 %v2603_v25  ;;  %1927 = vmatpush.bf16.msrb.mxu3 %v2699_v26  ;;  %v967_v43 = vpop.f32.mrf.mxu0  ;;  %v980_v44 = vpop.f32.mrf.mxu1 }
 0x124   :  { %1890 = vmatpush.bf16.msrb.mxu0 %v2387_v20  ;;  %1903 = vmatpush.bf16.msrb.mxu1 %v2483_v34 }
 0x127   :  { %1915 = vmatpush.bf16.msrb.mxu2 %v2591_v36  ;;  %1928 = vmatpush.bf16.msrb.mxu3 %v2687_v37 }
 0x128   :  { %1891 = vmatmul.bf16.vlgmr.msrb.gmra.mxu0 %v3246_v21  ;;  %1904 = vmatmul.bf16.vlgmr.msrb.gmra.mxu1 %v3248_v35  ;;  %v424_v35 = vld [vmem:[%s3282_s4] sm:$0x7] }
 0x129   :  { %v427_v54 = vperm.slane %v424_v35, 1  ;;  %v426_v55 = vperm.slane %v424_v35, 0  ;;  %v428_v2 = vperm.slane %v424_v35, 2 }
 0x12b   :  { %1916 = vmatpush.bf16.msrb.mxu2 %v2579_v41  ;;  %1929 = vmatpush.bf16.msrb.mxu3 %v2675_v42  ;;  %v969_v45 = vpop.f32.mrf.mxu0  ;;  %v982_v46 = vpop.f32.mrf.mxu1 }
 0x12e   :  { %1917 = vmatmul.bf16.vlgmr.msrb.gmra.mxu2 %v3252_v61  ;;  %1930 = vmatmul.bf16.vlgmr.msrb.gmra.mxu3 %v3254_v62  ;;  %v968_v62 = vadd.f32 %v967_v43, %v426_v55  ;;  %v1249_v55 = vperm.slane %v1245_v32, 2 }
 0x130   :  { %v981_v0 = vadd.f32 %v980_v44, %v968_v62 }
 0x131   :  { %v993_v47 = vpop.f32.mrf.mxu2  ;;  %v1006_v48 = vpop.f32.mrf.mxu3 }
 0x132   :  { %v994_v5 = vadd.f32 %v993_v47, %v981_v0 }
 0x133   :  { %v1019_v49 = vpop.f32.mrf.mxu0  ;;  %v1032_v50 = vpop.f32.mrf.mxu1 }
 0x134   :  { %v1020_v59 = vadd.f32 %v1019_v49, %v427_v54  ;;  %v1007_v10 = vadd.f32 %v1006_v48, %v994_v5 }
 0x136   :  { %v1033_v63 = vadd.f32 %v1032_v50, %v1020_v59  ;;  %v1114_v15 = vmax.f32 %v1007_v10, 0.0 }
 0x138   :  { %v1946_v24 = vmul.f32 %v1940_v16, %v1114_v15 }
 0x139   :  { %v995_v51 = vpop.f32.mrf.mxu2  ;;  %v1008_v52 = vpop.f32.mrf.mxu3 }
 0x13a   :  { %v1248_v51 = vperm.slane %v1245_v32, 1 }
 0x13b   :  { %v1021_v53 = vpop.f32.mrf.mxu0  ;;  %v1034_v21 = vpop.f32.mrf.mxu1 }
 0x141   :  { %v1045_v58 = vpop.f32.mrf.mxu2  ;;  %v1058_v61 = vpop.f32.mrf.mxu3 }
 0x142   :  { %v1046_v1 = vadd.f32 %v1045_v58, %v1033_v63  ;;  %v1953_v63 = vld [vmem:[#allocation9] sm:$0x7] }
 0x143   :  { %v1957_v10 = vperm.slane %v1953_v63, 2 }
 0x144   :  { %v1059_v57 = vadd.f32 %v1058_v61, %v1046_v1  ;;  %v1956_v1 = vperm.slane %v1953_v63, 1 }
 0x146   :  { %v1071_v60 = vpop.f32.mrf.mxu0  ;;  %v1084_v30 = vpop.f32.mrf.mxu1  ;;  %v1115_v11 = vmax.f32 %v1059_v57, 0.0  ;;  %v1955_v57 = vperm.slane %v1953_v63, 0 }
 0x147   :  { %v1072_v7 = vadd.f32 %v1071_v60, %v428_v2 }
 0x148   :  { %v1947_v19 = vmul.f32 %v1941_v56, %v1115_v11 }
 0x149   :  { %v1047_v3 = vpop.f32.mrf.mxu2  ;;  %v1060_v4 = vpop.f32.mrf.mxu3  ;;  %v1085_v12 = vadd.f32 %v1084_v30, %v1072_v7 }
 0x14a   :  { %v1949_v27 = vadd.f32 %v1947_v19, %v1946_v24 }
 0x14e   :  { %v1073_v8 = vpop.f32.mrf.mxu0  ;;  %v1086_v9 = vpop.f32.mrf.mxu1 }
 0x151   :  { %v1097_v13 = vpop.f32.mrf.mxu2  ;;  %v1110_v14 = vpop.f32.mrf.mxu3 }
 0x152   :  { %v1098_v17 = vadd.f32 %v1097_v13, %v1085_v12 }
 0x154   :  { %v1111_v22 = vadd.f32 %v1110_v14, %v1098_v17  ;;  %v2959_v17 = vld [vmem:[%s3287_s9] ss:$0 sm:$0xff] }
 0x156   :  { %v1116_v25 = vmax.f32 %v1111_v22, 0.0 }
 0x158   :  { %v1948_v26 = vmul.f32 %v1942_v23, %v1116_v25 }
 0x159   :  { %v1099_v28 = vpop.f32.mrf.mxu2  ;;  %v1112_v29 = vpop.f32.mrf.mxu3 }
 0x15a   :  { %v1950_v31 = vadd.f32 %v1949_v27, %v1948_v26 }
 0x15c   :  { %1951 = vadd.xlane.f32.xlu0 %v1950_v31 }
 0x166   :  { %v1788_v20 = vpop.f32.mrf.mxu0  ;;  %v1801_v34 = vpop.f32.mrf.mxu1 }
 0x167   :  { %v1789_v36 = vadd.f32 %v1788_v20, %v1247_v33 }
 0x169   :  { %v1802_v37 = vadd.f32 %v1801_v34, %v1789_v36 }
 0x16e   :  { %v1790_v38 = vpop.f32.mrf.mxu0  ;;  %v1803_v39 = vpop.f32.mrf.mxu1 }
 0x171   :  { %v1814_v40 = vpop.f32.mrf.mxu2  ;;  %v1827_v18 = vpop.f32.mrf.mxu3 }
 0x172   :  { %v1815_v58 = vadd.f32 %v1814_v40, %v1802_v37 }
 0x174   :  { %v1828_v62 = vadd.f32 %v1827_v18, %v1815_v58 }
 0x176   :  { %v1935_v5 = vmax.f32 %v1828_v62, 0.0 }
 0x178   :  { %v1961_v6 = vmul.f32 %v1955_v57, %v1935_v5 }
 0x179   :  { %v1816_v41 = vpop.f32.mrf.mxu2  ;;  %v1829_v42 = vpop.f32.mrf.mxu3 }
 0x186   :  { %v1840_v43 = vpop.f32.mrf.mxu0  ;;  %v1853_v44 = vpop.f32.mrf.mxu1 }
 0x187   :  { %v1841_v52 = vadd.f32 %v1840_v43, %v1248_v51 }
 0x189   :  { %v1854_v53 = vadd.f32 %v1853_v44, %v1841_v52 }
 0x18e   :  { %v1842_v45 = vpop.f32.mrf.mxu0  ;;  %v1855_v46 = vpop.f32.mrf.mxu1 }
 0x191   :  { %v1866_v47 = vpop.f32.mrf.mxu2  ;;  %v1879_v48 = vpop.f32.mrf.mxu3 }
 0x192   :  { %v1867_v54 = vadd.f32 %v1866_v47, %v1854_v53 }
 0x194   :  { %v1880_v61 = vadd.f32 %v1879_v48, %v1867_v54 }
 0x196   :  { %v1936_v0 = vmax.f32 %v1880_v61, 0.0 }
 0x198   :  { %v1962_v8 = vmul.f32 %v1956_v1, %v1936_v0 }
 0x199   :  { %v1868_v49 = vpop.f32.mrf.mxu2  ;;  %v1881_v50 = vpop.f32.mrf.mxu3 }
 0x19a   :  { %v1964_v12 = vadd.f32 %v1962_v8, %v1961_v6 }
 0x1a5   :  { %v1892_v21 = vpop.f32.mrf.mxu0  ;;  %v1905_v35 = vpop.f32.mrf.mxu1 }
 0x1a6   :  { %v1893_v59 = vadd.f32 %v1892_v21, %v1249_v55 }
 0x1a8   :  { %v1906_v2 = vadd.f32 %v1905_v35, %v1893_v59 }
 0x1ad   :  { %v1894_v60 = vpop.f32.mrf.mxu0  ;;  %v1907_v30 = vpop.f32.mrf.mxu1 }
 0x1b1   :  { %v1918_v3 = vpop.f32.mrf.mxu2  ;;  %v1931_v4 = vpop.f32.mrf.mxu3 }
 0x1b2   :  { %v1919_v7 = vadd.f32 %v1918_v3, %v1906_v2 }
 0x1b4   :  { %v1932_v9 = vadd.f32 %v1931_v4, %v1919_v7 }
 0x1b6   :  { %v1937_v11 = vmax.f32 %v1932_v9, 0.0 }
 0x1b8   :  { %v1963_v56 = vmul.f32 %v1957_v10, %v1937_v11 }
 0x1b9   :  { %v1920_v13 = vpop.f32.mrf.mxu2  ;;  %v1933_v14 = vpop.f32.mrf.mxu3 }
 0x1ba   :  { %v1965_v15 = vadd.f32 %v1964_v12, %v1963_v56 }
 0x1bc   :  { %1966 = vadd.xlane.f32.xlu0 %v1965_v15 }
 0x1cf   :  { %v1952_v16 = vpop.xlane.xlu0 %1951 }
 0x22f   :  { %v1967_v19 = vpop.xlane.xlu0 %1966 }
 0x230   :  { %v1969_v22 = vsel %vm1968_vm2, %v1952_v16, %v1967_v19 }
 0x231   :  { %v1974_v23 = vadd.f32 %v2959_v17, %v1969_v22 }
 0x233   :  { %1976 = vst.msk [vmem:[%s3288_s10] sm:$0xff] %vm1975_vm3, %v1974_v23 }
 0x234   :  { %1981 = vsyncpa [#allocation3], 1 }
 0x235   :  { %1982 = vsyncpa [#allocation5], 1 }
 0x236   :  { %1983 = vsyncpa [#allocation8], 1 }

</bundles_post_ra>
